<compile_context>
chip_gen: v7x
topology: tpu7x:2x2x1
jax: 0.10.0
libtpu: 0.0.40
codegen_flags: <defaults>
</compile_context>

<pallas_src>
import functools

import jax
import jax.numpy as jnp
from jax.experimental import pallas as pl

HIDDEN = [64, 128, 256, 512, 256, 128, 64]
BN_EPS = 1e-5
_LANE = 128          # lane width: all fan-outs padded to a multiple of this
_SUBLANE_BF16 = 16   # bf16 sublane tile: all fan-ins padded to a multiple


def _pad_to(n, m):
    return ((n + m - 1) // m) * m


def _weight_layout(input_size, output_size):
    """Plan the packed bf16 weight slabs (grouped by padded output width).

    Returns:
      widths:      sorted distinct padded output widths (one slab per width)
      layout:      per layer (slab_idx, row_start, fan_in_pad, fan_out_pad)
      slab_shapes: (rows, width) of each bf16 slab
      in_pad:      sublane-padded input size
      out_pad:     lane-padded output size
      hid_pad:     lane-padded hidden widths
    """
    in_pad = _pad_to(input_size, _SUBLANE_BF16)
    out_pad = _pad_to(output_size, _LANE)
    hid_pad = [_pad_to(h, _LANE) for h in HIDDEN]
    fan_in = [in_pad] + hid_pad
    fan_out = hid_pad + [out_pad]
    widths = sorted(set(fan_out))
    offs = {w: 0 for w in widths}
    layout = []
    for fi, fo in zip(fan_in, fan_out):
        # every static row slice must land on a bf16 sublane-tile boundary
        assert fi % _SUBLANE_BF16 == 0 and fo % _LANE == 0
        assert offs[fo] % _SUBLANE_BF16 == 0
        layout.append((widths.index(fo), offs[fo], fi, fo))
        offs[fo] += fi
    slab_shapes = [(offs[w], w) for w in widths]
    return widths, layout, slab_shapes, in_pad, out_pad, hid_pad


def _make_kernel(layout, hid_pad, num_slabs, out_pad, batch):
    n_hidden = len(hid_pad)
    inv_b = 1.0 / batch

    def kernel(x_ref, *refs):
        slabs = refs[:num_slabs]          # bf16 weight slabs (by output width)
        vec_ref = refs[num_slabs]         # f32 (16, 512): gammas/betas/final bias
        out_ref = refs[num_slabs + 1]

        def weight(i):
            wi, r0, fi, _ = layout[i]
            return slabs[wi][r0:r0 + fi, :]   # static, 16-row-aligned slice

        # x goes straight to bf16 for the first MXU push
        h = x_ref[...].astype(jnp.bfloat16)
        for i in range(n_hidden):
            # Linear (hidden bias omitted: exact no-op under train-mode BN)
            z = jnp.dot(h, weight(i), preferred_element_type=jnp.float32)
            # two-pass batch stats in f32 (numerically robust)
            mean = jnp.sum(z, axis=0, keepdims=True) * inv_b
            d = z - mean
            var = jnp.sum(d * d, axis=0, keepdims=True) * inv_b
            fo = hid_pad[i]
            gamma = vec_ref[2 * i:2 * i + 1, :fo]
            beta = vec_ref[2 * i + 1:2 * i + 2, :fo]
            # fused BN + ReLU: one broadcast FMA over the (B, fo) tile.
            # Padded columns have gamma = beta = 0 -> stay exactly 0.
            s = gamma * jax.lax.rsqrt(var + BN_EPS)
            h = jnp.maximum(d * s + beta, 0.0).astype(jnp.bfloat16)

        # final Linear, lane-dense 128-wide output (wrapper slices real cols)
        b_out = vec_ref[2 * n_hidden:2 * n_hidden + 1, :out_pad]
        out_ref[...] = jnp.dot(h, weight(n_hidden),
                               preferred_element_type=jnp.float32) + b_out

    return kernel


def init_params(key, input_size, output_size=3):
    """Deterministic PyTorch-style init. Weights stored as [in, out] f32."""
    dims = [input_size] + HIDDEN + [output_size]
    params = []
    for i in range(len(dims) - 1):
        fan_in, fan_out = dims[i], dims[i + 1]
        key, kw, kb = jax.random.split(key, 3)
        bound = 1.0 / jnp.sqrt(fan_in)
        w = jax.random.uniform(kw, (fan_in, fan_out), jnp.float32, -bound, bound)
        b = jax.random.uniform(kb, (1, fan_out), jnp.float32, -bound, bound)
        params.append((w, b))
    bn = [(jnp.ones((1, h), jnp.float32), jnp.zeros((1, h), jnp.float32))
          for h in HIDDEN]
    return params, bn


def pack_params(params, bn, input_size, output_size):
    """Pack f32 master params into bf16 weight slabs + one f32 vector slab."""
    widths, layout, slab_shapes, _, _, _ = _weight_layout(input_size, output_size)

    slabs = [jnp.zeros(s, jnp.bfloat16) for s in slab_shapes]
    for i, (wi, r0, fi, fo) in enumerate(layout):
        w = params[i][0]
        pad_r, pad_c = fi - w.shape[0], fo - w.shape[1]
        if pad_r or pad_c:
            w = jnp.pad(w, ((0, pad_r), (0, pad_c)))     # zero-padded rows/cols
        slabs[wi] = slabs[wi].at[r0:r0 + fi, :].set(w.astype(jnp.bfloat16))

    n_rows = 2 * len(HIDDEN) + 1                          # gamma_i, beta_i, b_out
    vec = jnp.zeros((_pad_to(n_rows, 8), max(widths)), jnp.float32)
    for i, (g, be) in enumerate(bn):
        vec = vec.at[2 * i, :g.shape[1]].set(g[0])        # padded cols stay 0
        vec = vec.at[2 * i + 1, :be.shape[1]].set(be[0])
    b_out = params[-1][1][0]
    vec = vec.at[2 * len(HIDDEN), :b_out.shape[0]].set(b_out)
    return tuple(slabs), vec


@functools.lru_cache(maxsize=None)
def _build_forward(input_size, output_size, batch):
    """Build the pallas_call + jitted wrapper once per static configuration."""
    widths, layout, _, in_pad, out_pad, hid_pad = _weight_layout(
        input_size, output_size)
    kernel = _make_kernel(layout, hid_pad, len(widths), out_pad, batch)
    call = pl.pallas_call(
        kernel,
        out_shape=jax.ShapeDtypeStruct((batch, out_pad), jnp.float32),
    )

    @jax.jit
    def fwd(x, slabs, vec):
        if in_pad != x.shape[1]:
            x = jnp.pad(x, ((0, 0), (0, in_pad - x.shape[1])))
        out = call(x, *slabs, vec)
        return out[:, :output_size]

    return fwd


def dqn_forward(x, slabs, vec, input_size, output_size):
    return _build_forward(int(input_size), int(output_size),
                          int(x.shape[0]))(x, slabs, vec)


def dqn_reference(x, params, bn):
    """Pure-JAX reference mirroring the kernel numerics (bf16 weights/acts at
    the matmul, f32 accumulation and BN), keeping the hidden biases that the
    kernel omits (they cancel exactly under train-mode BN)."""
    h = x.astype(jnp.float32)
    for i in range(len(HIDDEN)):
        w, b = params[i]
        g, be = bn[i]
        z = jnp.dot(h.astype(jnp.bfloat16), w.astype(jnp.bfloat16),
                    preferred_element_type=jnp.float32) + b
        mean = jnp.mean(z, axis=0, keepdims=True)
        var = jnp.mean((z - mean) ** 2, axis=0, keepdims=True)   # biased var
        h = jnp.maximum((z - mean) * jax.lax.rsqrt(var + BN_EPS) * g + be, 0.0)
    w, b = params[-1]
    return jnp.dot(h.astype(jnp.bfloat16), w.astype(jnp.bfloat16),
                   preferred_element_type=jnp.float32) + b


if __name__ == "__main__":
    key = jax.random.PRNGKey(0)
    input_size = 16
    output_size = 3
    batch = 8  # BatchNorm1d (train mode) needs batch > 1; 8 aligns to sublanes

    kx, kp = jax.random.split(key)
    x = jax.random.normal(kx, (batch, input_size), jnp.float32)
    params, bn = init_params(kp, input_size, output_size)
    slabs, vec = pack_params(params, bn, input_size, output_size)

    out = dqn_forward(x, slabs, vec, input_size, output_size)
    out = jax.block_until_ready(out)
    # second call: hits the lru_cache'd, already-compiled pallas_call
    out2 = jax.block_until_ready(
        dqn_forward(x, slabs, vec, input_size, output_size))

    ref = dqn_reference(x, params, bn)
    assert out.shape == (batch, output_size)
    assert jnp.allclose(out, ref, atol=1e-3, rtol=1e-3), (
        float(jnp.max(jnp.abs(out - ref))))
    assert jnp.array_equal(out, out2)

    print("KERNEL_OK")
</pallas_src>

<mosaic_0001>
module attributes {stable_mosaic.version = 11 : i64} {
  func.func @kernel(%arg0: memref<8x16xf32, #tpu.memory_space<vmem>>, %arg1: memref<656x128xbf16, #tpu.memory_space<vmem>>, %arg2: memref<640x256xbf16, #tpu.memory_space<vmem>>, %arg3: memref<256x512xbf16, #tpu.memory_space<vmem>>, %arg4: memref<16x512xf32, #tpu.memory_space<vmem>>, %arg5: memref<8x128xf32, #tpu.memory_space<vmem>>) attributes {dimension_semantics = [], scalar_prefetch = 0 : i64, scratch_operands = 0 : i64, tpu.core_type = #tpu.core_type<tc>} {
    %c0 = arith.constant 0 : index
    %c0_0 = arith.constant 0 : index
    %0 = vector.load %arg0[%c0, %c0_0] : memref<8x16xf32, #tpu.memory_space<vmem>>, vector<8x16xf32>
    %1 = arith.truncf %0 : vector<8x16xf32> to vector<8x16xbf16>
    %c0_1 = arith.constant 0 : index
    %c0_2 = arith.constant 0 : index
    %2 = vector.load %arg1[%c0_1, %c0_2] : memref<656x128xbf16, #tpu.memory_space<vmem>>, vector<16x128xbf16>
    %cst = arith.constant dense<0.000000e+00> : vector<8x128xf32>
    %3 = tpu.matmul %1, %2, %cst {dimension_numbers = #tpu.dot_dimension_numbers<[1], [0], [0], [1], [0, 0, 1, 1], [], []>} : vector<8x16xbf16>, vector<16x128xbf16>, vector<8x128xf32> -> vector<8x128xf32>
    %cst_3 = arith.constant dense<0.000000e+00> : vector<128xf32>
    %4 = vector.multi_reduction <add>, %3, %cst_3 [0] : vector<8x128xf32> to vector<128xf32>
    %5 = vector.shape_cast %4 : vector<128xf32> to vector<1x128xf32>
    %cst_4 = arith.constant 1.250000e-01 : f32
    %6 = vector.broadcast %cst_4 : f32 to vector<1x128xf32>
    %7 = arith.mulf %5, %6 : vector<1x128xf32>
    %8 = vector.broadcast %7 : vector<1x128xf32> to vector<8x128xf32>
    %9 = arith.subf %3, %8 : vector<8x128xf32>
    %10 = arith.mulf %9, %9 : vector<8x128xf32>
    %cst_5 = arith.constant dense<0.000000e+00> : vector<128xf32>
    %11 = vector.multi_reduction <add>, %10, %cst_5 [0] : vector<8x128xf32> to vector<128xf32>
    %12 = vector.shape_cast %11 : vector<128xf32> to vector<1x128xf32>
    %cst_6 = arith.constant 1.250000e-01 : f32
    %13 = vector.broadcast %cst_6 : f32 to vector<1x128xf32>
    %14 = arith.mulf %12, %13 : vector<1x128xf32>
    %c0_7 = arith.constant 0 : index
    %c0_8 = arith.constant 0 : index
    %15 = vector.load %arg4[%c0_7, %c0_8] : memref<16x512xf32, #tpu.memory_space<vmem>>, vector<1x128xf32>
    %c1 = arith.constant 1 : index
    %c0_9 = arith.constant 0 : index
    %16 = vector.load %arg4[%c1, %c0_9] : memref<16x512xf32, #tpu.memory_space<vmem>>, vector<1x128xf32>
    %cst_10 = arith.constant 9.99999974E-6 : f32
    %17 = vector.broadcast %cst_10 : f32 to vector<1x128xf32>
    %18 = arith.addf %14, %17 : vector<1x128xf32>
    %19 = math.rsqrt %18 : vector<1x128xf32>
    %20 = arith.mulf %15, %19 : vector<1x128xf32>
    %21 = vector.broadcast %20 : vector<1x128xf32> to vector<8x128xf32>
    %22 = arith.mulf %9, %21 : vector<8x128xf32>
    %23 = vector.broadcast %16 : vector<1x128xf32> to vector<8x128xf32>
    %24 = arith.addf %22, %23 : vector<8x128xf32>
    %cst_11 = arith.constant 0.000000e+00 : f32
    %25 = vector.broadcast %cst_11 : f32 to vector<8x128xf32>
    %26 = arith.maximumf %24, %25 : vector<8x128xf32>
    %27 = arith.truncf %26 : vector<8x128xf32> to vector<8x128xbf16>
    %c16 = arith.constant 16 : index
    %c0_12 = arith.constant 0 : index
    %28 = vector.load %arg1[%c16, %c0_12] : memref<656x128xbf16, #tpu.memory_space<vmem>>, vector<128x128xbf16>
    %cst_13 = arith.constant dense<0.000000e+00> : vector<8x128xf32>
    %29 = tpu.matmul %27, %28, %cst_13 {dimension_numbers = #tpu.dot_dimension_numbers<[1], [0], [0], [1], [0, 0, 1, 1], [], []>} : vector<8x128xbf16>, vector<128x128xbf16>, vector<8x128xf32> -> vector<8x128xf32>
    %cst_14 = arith.constant dense<0.000000e+00> : vector<128xf32>
    %30 = vector.multi_reduction <add>, %29, %cst_14 [0] : vector<8x128xf32> to vector<128xf32>
    %31 = vector.shape_cast %30 : vector<128xf32> to vector<1x128xf32>
    %cst_15 = arith.constant 1.250000e-01 : f32
    %32 = vector.broadcast %cst_15 : f32 to vector<1x128xf32>
    %33 = arith.mulf %31, %32 : vector<1x128xf32>
    %34 = vector.broadcast %33 : vector<1x128xf32> to vector<8x128xf32>
    %35 = arith.subf %29, %34 : vector<8x128xf32>
    %36 = arith.mulf %35, %35 : vector<8x128xf32>
    %cst_16 = arith.constant dense<0.000000e+00> : vector<128xf32>
    %37 = vector.multi_reduction <add>, %36, %cst_16 [0] : vector<8x128xf32> to vector<128xf32>
    %38 = vector.shape_cast %37 : vector<128xf32> to vector<1x128xf32>
    %cst_17 = arith.constant 1.250000e-01 : f32
    %39 = vector.broadcast %cst_17 : f32 to vector<1x128xf32>
    %40 = arith.mulf %38, %39 : vector<1x128xf32>
    %c2 = arith.constant 2 : index
    %c0_18 = arith.constant 0 : index
    %41 = vector.load %arg4[%c2, %c0_18] : memref<16x512xf32, #tpu.memory_space<vmem>>, vector<1x128xf32>
    %c3 = arith.constant 3 : index
    %c0_19 = arith.constant 0 : index
    %42 = vector.load %arg4[%c3, %c0_19] : memref<16x512xf32, #tpu.memory_space<vmem>>, vector<1x128xf32>
    %cst_20 = arith.constant 9.99999974E-6 : f32
    %43 = vector.broadcast %cst_20 : f32 to vector<1x128xf32>
    %44 = arith.addf %40, %43 : vector<1x128xf32>
    %45 = math.rsqrt %44 : vector<1x128xf32>
    %46 = arith.mulf %41, %45 : vector<1x128xf32>
    %47 = vector.broadcast %46 : vector<1x128xf32> to vector<8x128xf32>
    %48 = arith.mulf %35, %47 : vector<8x128xf32>
    %49 = vector.broadcast %42 : vector<1x128xf32> to vector<8x128xf32>
    %50 = arith.addf %48, %49 : vector<8x128xf32>
    %cst_21 = arith.constant 0.000000e+00 : f32
    %51 = vector.broadcast %cst_21 : f32 to vector<8x128xf32>
    %52 = arith.maximumf %50, %51 : vector<8x128xf32>
    %53 = arith.truncf %52 : vector<8x128xf32> to vector<8x128xbf16>
    %c0_22 = arith.constant 0 : index
    %c0_23 = arith.constant 0 : index
    %54 = vector.load %arg2[%c0_22, %c0_23] : memref<640x256xbf16, #tpu.memory_space<vmem>>, vector<128x256xbf16>
    %cst_24 = arith.constant dense<0.000000e+00> : vector<8x256xf32>
    %55 = tpu.matmul %53, %54, %cst_24 {dimension_numbers = #tpu.dot_dimension_numbers<[1], [0], [0], [1], [0, 0, 1, 1], [], []>} : vector<8x128xbf16>, vector<128x256xbf16>, vector<8x256xf32> -> vector<8x256xf32>
    %cst_25 = arith.constant dense<0.000000e+00> : vector<256xf32>
    %56 = vector.multi_reduction <add>, %55, %cst_25 [0] : vector<8x256xf32> to vector<256xf32>
    %57 = vector.shape_cast %56 : vector<256xf32> to vector<1x256xf32>
    %cst_26 = arith.constant 1.250000e-01 : f32
    %58 = vector.broadcast %cst_26 : f32 to vector<1x256xf32>
    %59 = arith.mulf %57, %58 : vector<1x256xf32>
    %60 = vector.broadcast %59 : vector<1x256xf32> to vector<8x256xf32>
    %61 = arith.subf %55, %60 : vector<8x256xf32>
    %62 = arith.mulf %61, %61 : vector<8x256xf32>
    %cst_27 = arith.constant dense<0.000000e+00> : vector<256xf32>
    %63 = vector.multi_reduction <add>, %62, %cst_27 [0] : vector<8x256xf32> to vector<256xf32>
    %64 = vector.shape_cast %63 : vector<256xf32> to vector<1x256xf32>
    %cst_28 = arith.constant 1.250000e-01 : f32
    %65 = vector.broadcast %cst_28 : f32 to vector<1x256xf32>
    %66 = arith.mulf %64, %65 : vector<1x256xf32>
    %c4 = arith.constant 4 : index
    %c0_29 = arith.constant 0 : index
    %67 = vector.load %arg4[%c4, %c0_29] : memref<16x512xf32, #tpu.memory_space<vmem>>, vector<1x256xf32>
    %c5 = arith.constant 5 : index
    %c0_30 = arith.constant 0 : index
    %68 = vector.load %arg4[%c5, %c0_30] : memref<16x512xf32, #tpu.memory_space<vmem>>, vector<1x256xf32>
    %cst_31 = arith.constant 9.99999974E-6 : f32
    %69 = vector.broadcast %cst_31 : f32 to vector<1x256xf32>
    %70 = arith.addf %66, %69 : vector<1x256xf32>
    %71 = math.rsqrt %70 : vector<1x256xf32>
    %72 = arith.mulf %67, %71 : vector<1x256xf32>
    %73 = vector.broadcast %72 : vector<1x256xf32> to vector<8x256xf32>
    %74 = arith.mulf %61, %73 : vector<8x256xf32>
    %75 = vector.broadcast %68 : vector<1x256xf32> to vector<8x256xf32>
    %76 = arith.addf %74, %75 : vector<8x256xf32>
    %cst_32 = arith.constant 0.000000e+00 : f32
    %77 = vector.broadcast %cst_32 : f32 to vector<8x256xf32>
    %78 = arith.maximumf %76, %77 : vector<8x256xf32>
    %79 = arith.truncf %78 : vector<8x256xf32> to vector<8x256xbf16>
    %c0_33 = arith.constant 0 : index
    %c0_34 = arith.constant 0 : index
    %80 = vector.load %arg3[%c0_33, %c0_34] : memref<256x512xbf16, #tpu.memory_space<vmem>>, vector<256x512xbf16>
    %cst_35 = arith.constant dense<0.000000e+00> : vector<8x512xf32>
    %81 = tpu.matmul %79, %80, %cst_35 {dimension_numbers = #tpu.dot_dimension_numbers<[1], [0], [0], [1], [0, 0, 1, 1], [], []>} : vector<8x256xbf16>, vector<256x512xbf16>, vector<8x512xf32> -> vector<8x512xf32>
    %cst_36 = arith.constant dense<0.000000e+00> : vector<512xf32>
    %82 = vector.multi_reduction <add>, %81, %cst_36 [0] : vector<8x512xf32> to vector<512xf32>
    %83 = vector.shape_cast %82 : vector<512xf32> to vector<1x512xf32>
    %cst_37 = arith.constant 1.250000e-01 : f32
    %84 = vector.broadcast %cst_37 : f32 to vector<1x512xf32>
    %85 = arith.mulf %83, %84 : vector<1x512xf32>
    %86 = vector.broadcast %85 : vector<1x512xf32> to vector<8x512xf32>
    %87 = arith.subf %81, %86 : vector<8x512xf32>
    %88 = arith.mulf %87, %87 : vector<8x512xf32>
    %cst_38 = arith.constant dense<0.000000e+00> : vector<512xf32>
    %89 = vector.multi_reduction <add>, %88, %cst_38 [0] : vector<8x512xf32> to vector<512xf32>
    %90 = vector.shape_cast %89 : vector<512xf32> to vector<1x512xf32>
    %cst_39 = arith.constant 1.250000e-01 : f32
    %91 = vector.broadcast %cst_39 : f32 to vector<1x512xf32>
    %92 = arith.mulf %90, %91 : vector<1x512xf32>
    %c6 = arith.constant 6 : index
    %c0_40 = arith.constant 0 : index
    %93 = vector.load %arg4[%c6, %c0_40] : memref<16x512xf32, #tpu.memory_space<vmem>>, vector<1x512xf32>
    %c7 = arith.constant 7 : index
    %c0_41 = arith.constant 0 : index
    %94 = vector.load %arg4[%c7, %c0_41] : memref<16x512xf32, #tpu.memory_space<vmem>>, vector<1x512xf32>
    %cst_42 = arith.constant 9.99999974E-6 : f32
    %95 = vector.broadcast %cst_42 : f32 to vector<1x512xf32>
    %96 = arith.addf %92, %95 : vector<1x512xf32>
    %97 = math.rsqrt %96 : vector<1x512xf32>
    %98 = arith.mulf %93, %97 : vector<1x512xf32>
    %99 = vector.broadcast %98 : vector<1x512xf32> to vector<8x512xf32>
    %100 = arith.mulf %87, %99 : vector<8x512xf32>
    %101 = vector.broadcast %94 : vector<1x512xf32> to vector<8x512xf32>
    %102 = arith.addf %100, %101 : vector<8x512xf32>
    %cst_43 = arith.constant 0.000000e+00 : f32
    %103 = vector.broadcast %cst_43 : f32 to vector<8x512xf32>
    %104 = arith.maximumf %102, %103 : vector<8x512xf32>
    %105 = arith.truncf %104 : vector<8x512xf32> to vector<8x512xbf16>
    %c128 = arith.constant 128 : index
    %c0_44 = arith.constant 0 : index
    %106 = vector.load %arg2[%c128, %c0_44] : memref<640x256xbf16, #tpu.memory_space<vmem>>, vector<512x256xbf16>
    %cst_45 = arith.constant dense<0.000000e+00> : vector<8x256xf32>
    %107 = tpu.matmul %105, %106, %cst_45 {dimension_numbers = #tpu.dot_dimension_numbers<[1], [0], [0], [1], [0, 0, 1, 1], [], []>} : vector<8x512xbf16>, vector<512x256xbf16>, vector<8x256xf32> -> vector<8x256xf32>
    %cst_46 = arith.constant dense<0.000000e+00> : vector<256xf32>
    %108 = vector.multi_reduction <add>, %107, %cst_46 [0] : vector<8x256xf32> to vector<256xf32>
    %109 = vector.shape_cast %108 : vector<256xf32> to vector<1x256xf32>
    %cst_47 = arith.constant 1.250000e-01 : f32
    %110 = vector.broadcast %cst_47 : f32 to vector<1x256xf32>
    %111 = arith.mulf %109, %110 : vector<1x256xf32>
    %112 = vector.broadcast %111 : vector<1x256xf32> to vector<8x256xf32>
    %113 = arith.subf %107, %112 : vector<8x256xf32>
    %114 = arith.mulf %113, %113 : vector<8x256xf32>
    %cst_48 = arith.constant dense<0.000000e+00> : vector<256xf32>
    %115 = vector.multi_reduction <add>, %114, %cst_48 [0] : vector<8x256xf32> to vector<256xf32>
    %116 = vector.shape_cast %115 : vector<256xf32> to vector<1x256xf32>
    %cst_49 = arith.constant 1.250000e-01 : f32
    %117 = vector.broadcast %cst_49 : f32 to vector<1x256xf32>
    %118 = arith.mulf %116, %117 : vector<1x256xf32>
    %c8 = arith.constant 8 : index
    %c0_50 = arith.constant 0 : index
    %119 = vector.load %arg4[%c8, %c0_50] : memref<16x512xf32, #tpu.memory_space<vmem>>, vector<1x256xf32>
    %c9 = arith.constant 9 : index
    %c0_51 = arith.constant 0 : index
    %120 = vector.load %arg4[%c9, %c0_51] : memref<16x512xf32, #tpu.memory_space<vmem>>, vector<1x256xf32>
    %cst_52 = arith.constant 9.99999974E-6 : f32
    %121 = vector.broadcast %cst_52 : f32 to vector<1x256xf32>
    %122 = arith.addf %118, %121 : vector<1x256xf32>
    %123 = math.rsqrt %122 : vector<1x256xf32>
    %124 = arith.mulf %119, %123 : vector<1x256xf32>
    %125 = vector.broadcast %124 : vector<1x256xf32> to vector<8x256xf32>
    %126 = arith.mulf %113, %125 : vector<8x256xf32>
    %127 = vector.broadcast %120 : vector<1x256xf32> to vector<8x256xf32>
    %128 = arith.addf %126, %127 : vector<8x256xf32>
    %cst_53 = arith.constant 0.000000e+00 : f32
    %129 = vector.broadcast %cst_53 : f32 to vector<8x256xf32>
    %130 = arith.maximumf %128, %129 : vector<8x256xf32>
    %131 = arith.truncf %130 : vector<8x256xf32> to vector<8x256xbf16>
    %c144 = arith.constant 144 : index
    %c0_54 = arith.constant 0 : index
    %132 = vector.load %arg1[%c144, %c0_54] : memref<656x128xbf16, #tpu.memory_space<vmem>>, vector<256x128xbf16>
    %cst_55 = arith.constant dense<0.000000e+00> : vector<8x128xf32>
    %133 = tpu.matmul %131, %132, %cst_55 {dimension_numbers = #tpu.dot_dimension_numbers<[1], [0], [0], [1], [0, 0, 1, 1], [], []>} : vector<8x256xbf16>, vector<256x128xbf16>, vector<8x128xf32> -> vector<8x128xf32>
    %cst_56 = arith.constant dense<0.000000e+00> : vector<128xf32>
    %134 = vector.multi_reduction <add>, %133, %cst_56 [0] : vector<8x128xf32> to vector<128xf32>
    %135 = vector.shape_cast %134 : vector<128xf32> to vector<1x128xf32>
    %cst_57 = arith.constant 1.250000e-01 : f32
    %136 = vector.broadcast %cst_57 : f32 to vector<1x128xf32>
    %137 = arith.mulf %135, %136 : vector<1x128xf32>
    %138 = vector.broadcast %137 : vector<1x128xf32> to vector<8x128xf32>
    %139 = arith.subf %133, %138 : vector<8x128xf32>
    %140 = arith.mulf %139, %139 : vector<8x128xf32>
    %cst_58 = arith.constant dense<0.000000e+00> : vector<128xf32>
    %141 = vector.multi_reduction <add>, %140, %cst_58 [0] : vector<8x128xf32> to vector<128xf32>
    %142 = vector.shape_cast %141 : vector<128xf32> to vector<1x128xf32>
    %cst_59 = arith.constant 1.250000e-01 : f32
    %143 = vector.broadcast %cst_59 : f32 to vector<1x128xf32>
    %144 = arith.mulf %142, %143 : vector<1x128xf32>
    %c10 = arith.constant 10 : index
    %c0_60 = arith.constant 0 : index
    %145 = vector.load %arg4[%c10, %c0_60] : memref<16x512xf32, #tpu.memory_space<vmem>>, vector<1x128xf32>
    %c11 = arith.constant 11 : index
    %c0_61 = arith.constant 0 : index
    %146 = vector.load %arg4[%c11, %c0_61] : memref<16x512xf32, #tpu.memory_space<vmem>>, vector<1x128xf32>
    %cst_62 = arith.constant 9.99999974E-6 : f32
    %147 = vector.broadcast %cst_62 : f32 to vector<1x128xf32>
    %148 = arith.addf %144, %147 : vector<1x128xf32>
    %149 = math.rsqrt %148 : vector<1x128xf32>
    %150 = arith.mulf %145, %149 : vector<1x128xf32>
    %151 = vector.broadcast %150 : vector<1x128xf32> to vector<8x128xf32>
    %152 = arith.mulf %139, %151 : vector<8x128xf32>
    %153 = vector.broadcast %146 : vector<1x128xf32> to vector<8x128xf32>
    %154 = arith.addf %152, %153 : vector<8x128xf32>
    %cst_63 = arith.constant 0.000000e+00 : f32
    %155 = vector.broadcast %cst_63 : f32 to vector<8x128xf32>
    %156 = arith.maximumf %154, %155 : vector<8x128xf32>
    %157 = arith.truncf %156 : vector<8x128xf32> to vector<8x128xbf16>
    %c400 = arith.constant 400 : index
    %c0_64 = arith.constant 0 : index
    %158 = vector.load %arg1[%c400, %c0_64] : memref<656x128xbf16, #tpu.memory_space<vmem>>, vector<128x128xbf16>
    %cst_65 = arith.constant dense<0.000000e+00> : vector<8x128xf32>
    %159 = tpu.matmul %157, %158, %cst_65 {dimension_numbers = #tpu.dot_dimension_numbers<[1], [0], [0], [1], [0, 0, 1, 1], [], []>} : vector<8x128xbf16>, vector<128x128xbf16>, vector<8x128xf32> -> vector<8x128xf32>
    %cst_66 = arith.constant dense<0.000000e+00> : vector<128xf32>
    %160 = vector.multi_reduction <add>, %159, %cst_66 [0] : vector<8x128xf32> to vector<128xf32>
    %161 = vector.shape_cast %160 : vector<128xf32> to vector<1x128xf32>
    %cst_67 = arith.constant 1.250000e-01 : f32
    %162 = vector.broadcast %cst_67 : f32 to vector<1x128xf32>
    %163 = arith.mulf %161, %162 : vector<1x128xf32>
    %164 = vector.broadcast %163 : vector<1x128xf32> to vector<8x128xf32>
    %165 = arith.subf %159, %164 : vector<8x128xf32>
    %166 = arith.mulf %165, %165 : vector<8x128xf32>
    %cst_68 = arith.constant dense<0.000000e+00> : vector<128xf32>
    %167 = vector.multi_reduction <add>, %166, %cst_68 [0] : vector<8x128xf32> to vector<128xf32>
    %168 = vector.shape_cast %167 : vector<128xf32> to vector<1x128xf32>
    %cst_69 = arith.constant 1.250000e-01 : f32
    %169 = vector.broadcast %cst_69 : f32 to vector<1x128xf32>
    %170 = arith.mulf %168, %169 : vector<1x128xf32>
    %c12 = arith.constant 12 : index
    %c0_70 = arith.constant 0 : index
    %171 = vector.load %arg4[%c12, %c0_70] : memref<16x512xf32, #tpu.memory_space<vmem>>, vector<1x128xf32>
    %c13 = arith.constant 13 : index
    %c0_71 = arith.constant 0 : index
    %172 = vector.load %arg4[%c13, %c0_71] : memref<16x512xf32, #tpu.memory_space<vmem>>, vector<1x128xf32>
    %cst_72 = arith.constant 9.99999974E-6 : f32
    %173 = vector.broadcast %cst_72 : f32 to vector<1x128xf32>
    %174 = arith.addf %170, %173 : vector<1x128xf32>
    %175 = math.rsqrt %174 : vector<1x128xf32>
    %176 = arith.mulf %171, %175 : vector<1x128xf32>
    %177 = vector.broadcast %176 : vector<1x128xf32> to vector<8x128xf32>
    %178 = arith.mulf %165, %177 : vector<8x128xf32>
    %179 = vector.broadcast %172 : vector<1x128xf32> to vector<8x128xf32>
    %180 = arith.addf %178, %179 : vector<8x128xf32>
    %cst_73 = arith.constant 0.000000e+00 : f32
    %181 = vector.broadcast %cst_73 : f32 to vector<8x128xf32>
    %182 = arith.maximumf %180, %181 : vector<8x128xf32>
    %183 = arith.truncf %182 : vector<8x128xf32> to vector<8x128xbf16>
    %c14 = arith.constant 14 : index
    %c0_74 = arith.constant 0 : index
    %184 = vector.load %arg4[%c14, %c0_74] : memref<16x512xf32, #tpu.memory_space<vmem>>, vector<1x128xf32>
    %c528 = arith.constant 528 : index
    %c0_75 = arith.constant 0 : index
    %185 = vector.load %arg1[%c528, %c0_75] : memref<656x128xbf16, #tpu.memory_space<vmem>>, vector<128x128xbf16>
    %cst_76 = arith.constant dense<0.000000e+00> : vector<8x128xf32>
    %186 = tpu.matmul %183, %185, %cst_76 {dimension_numbers = #tpu.dot_dimension_numbers<[1], [0], [0], [1], [0, 0, 1, 1], [], []>} : vector<8x128xbf16>, vector<128x128xbf16>, vector<8x128xf32> -> vector<8x128xf32>
    %187 = vector.broadcast %184 : vector<1x128xf32> to vector<8x128xf32>
    %188 = arith.addf %186, %187 : vector<8x128xf32>
    %c0_77 = arith.constant 0 : index
    %c0_78 = arith.constant 0 : index
    %189 = vector.load %arg5[%c0_77, %c0_78] : memref<8x128xf32, #tpu.memory_space<vmem>>, vector<8x128xf32>
    tpu.vector_store %arg5[%c0_77, %c0_78], %188 {strides = array<i32>} : memref<8x128xf32, #tpu.memory_space<vmem>>, vector<8x128xf32>,
    return
  }
}

</mosaic_0001>

<bundles_post_ra>
// kernel: fwd.1
= control target key start
LH: loop header
LB: loop body
LE: loop exit
PB: predicated region body
PF: predicated region fallthrough
CT: control target
= control target key end

     0   :  { %10 = vsyncpa [#allocation3], 0  ;;  %s3067_s0 = inlined_call_operand.hbm [shape: f32[8,16], index: 0, kind: input, shape index: {}]   ;;  %s3068_s1 = inlined_call_operand.hbm [shape: bf16[656,128], index: 1, kind: input, shape index: {}]   ;;  %s3069_s2 = inlined_call_operand.hbm [shape: bf16[640,256], index: 2, kind: input, shape index: {}]   ;;  %s3070_s3 = inlined_call_operand.hbm [shape: bf16[256,512], index: 3, kind: input, shape index: {}]   ;;  %s3071_s4 = inlined_call_operand.hbm [shape: f32[16,512], index: 4, kind: input, shape index: {}]   ;;  %s3072_s5 = inlined_call_operand.vmem [shape: f32[8,128], index: 5, kind: output, shape index: {}]  }
   0x1   :  { %11 = vsyncpa [#allocation5], 0 }
   0x2   :  { %12 = vsyncpa [#allocation8], 0  ;;  %s2862_s18 = smov [#allocation4]   ;;  %s2746_s22 = scalar_lea.hbm %s3068_s1, 5248 }
   0x3   :  { %s28_s19 = sshll.u32 %s2862_s18, 4  ;;  %p2747_p0 = scmp.ne.s32.totalorder %s3068_s1, %s2746_s22  ;;  %s29_s19 = int_to_ptr.vmem [resolvable:$true] %s28_s19 }
   0x4   :  { %p2750_p1 = scmp.lt.u32.totalorder %s2746_s22, %s3068_s1 }
   0x6   :  { %p2752_p2 = pnand %p2750_p1, %p2747_p0 }
   0x8   :  { %2755 = shalt.err (!%p2752_p2)
}
   0x9   :  { %s2756_s27 = scalar_lea.vmem %s29_s19, 5248  ;;  %p2761_p4 = scmp.lt.s32.totalorder %s29_s19, %s29_s19 }
   0xa   :  { %p2757_p3 = scmp.ne.s32.totalorder %s29_s19, %s2756_s27  ;;  %p2762_p5 = scmp.lt.s32.totalorder %s2756_s27, %s2756_s27 }
   0xc   :  { %p2763_p6 = por %p2762_p5, %p2761_p4 }
   0xe   :  { %p2764_p7 = pnand %p2763_p6, %p2757_p3 }
  0x10   :  { %2767 = shalt.err (!%p2764_p7)
}
  0x11   :  { %s2863_s28 = smov 64   ;;  %s2864_s29 = smov 4  }
  0x12   :  { %34 = dma.hbm_to_vmem [thread:$0]  %s3068_s1, 5248, %s29_s19, [#allocation5], %s2863_s28, %s2863_s28, %s2864_s29  }
  0x13   :  { %s2865_s7 = smov [#allocation7]   ;;  %s2768_s11 = scalar_lea.hbm %s3070_s3, 8192 }
  0x14   :  { %s52_s8 = sshll.u32 %s2865_s7, 4  ;;  %p2769_p8 = scmp.ne.s32.totalorder %s3070_s3, %s2768_s11  ;;  %s53_s8 = int_to_ptr.vmem [resolvable:$true] %s52_s8 }
  0x15   :  { %p2772_p9 = scmp.lt.u32.totalorder %s2768_s11, %s3070_s3 }
  0x17   :  { %p2774_p10 = pnand %p2772_p9, %p2769_p8 }
  0x19   :  { %2777 = shalt.err (!%p2774_p10)
}
  0x1a   :  { %s2778_s16 = scalar_lea.vmem %s53_s8, 8192  ;;  %p2783_p12 = scmp.lt.s32.totalorder %s53_s8, %s53_s8 }
  0x1b   :  { %p2779_p11 = scmp.ne.s32.totalorder %s53_s8, %s2778_s16  ;;  %p2784_p13 = scmp.lt.s32.totalorder %s2778_s16, %s2778_s16 }
  0x1d   :  { %p2785_p0 = por %p2784_p13, %p2783_p12 }
  0x1f   :  { %p2786_p1 = pnand %p2785_p0, %p2779_p11 }
  0x21   :  { %2789 = shalt.err (!%p2786_p1)
}
  0x22   :  { %s2866_s1 = smov 256   ;;  %s2867_s17 = smov 16  }
  0x23   :  { %58 = dma.hbm_to_vmem [thread:$0]  %s3070_s3, 8192, %s53_s8, [#allocation8], %s2866_s1, %s2866_s1, %s2867_s17  }
  0x24   :  { %s2868_s20 = smov [#allocation2]   ;;  %s2869_s22 = smov [#allocation6]  }
  0x25   :  { %s19_s21 = sshll.u32 %s2868_s20, 4  ;;  %s40_s23 = sshll.u32 %s2869_s22, 4  ;;  %s20_s21 = int_to_ptr.vmem [resolvable:$true] %s19_s21  ;;  %s2933_s23 = int_to_ptr.vmem [resolvable:$true] %s40_s23 }
  0x26   :  { %s2790_s26 = scalar_lea.hbm %s3067_s0, 128 }
  0x27   :  { %p2791_p2 = scmp.ne.s32.totalorder %s3067_s0, %s2790_s26  ;;  %p2794_p3 = scmp.lt.u32.totalorder %s2790_s26, %s3067_s0 }
  0x29   :  { %p2796_p4 = pnand %p2794_p3, %p2791_p2 }
  0x2b   :  { %2799 = shalt.err (!%p2796_p4)
}
  0x2c   :  { %s2800_s3 = scalar_lea.vmem %s20_s21, 128  ;;  %p2805_p6 = scmp.lt.s32.totalorder %s20_s21, %s20_s21 }
  0x2d   :  { %p2801_p5 = scmp.ne.s32.totalorder %s20_s21, %s2800_s3  ;;  %p2806_p7 = scmp.lt.s32.totalorder %s2800_s3, %s2800_s3 }
  0x2f   :  { %p2807_p8 = por %p2806_p7, %p2805_p6 }
  0x31   :  { %p2808_p9 = pnand %p2807_p8, %p2801_p5 }
  0x33   :  { %2811 = shalt.err (!%p2808_p9)
}
  0x34   :  { %22 = dma.hbm_to_vmem [thread:$0]  %s3067_s0, 128, %s20_s21, [#allocation3]  }
  0x35   :  { %s2812_s10 = scalar_lea.hbm %s3069_s2, 10240 }
  0x36   :  { %p2813_p10 = scmp.ne.s32.totalorder %s3069_s2, %s2812_s10  ;;  %p2816_p11 = scmp.lt.u32.totalorder %s2812_s10, %s3069_s2 }
  0x38   :  { %p2818_p12 = pnand %p2816_p11, %p2813_p10 }
  0x3a   :  { %2821 = shalt.err (!%p2818_p12)
}
  0x3b   :  { %s2822_s15 = scalar_lea.vmem %s2933_s23, 10240  ;;  %p2827_p0 = scmp.lt.s32.totalorder %s2933_s23, %s2933_s23 }
  0x3c   :  { %p2823_p13 = scmp.ne.s32.totalorder %s2933_s23, %s2822_s15  ;;  %p2828_p1 = scmp.lt.s32.totalorder %s2822_s15, %s2822_s15 }
  0x3e   :  { %p2829_p2 = por %p2828_p1, %p2827_p0 }
  0x40   :  { %p2830_p3 = pnand %p2829_p2, %p2823_p13 }
  0x42   :  { %2833 = shalt.err (!%p2830_p3)
}
  0x43   :  { %s2870_s0 = smov 128   ;;  %s2871_s16 = smov 8  }
  0x44   :  { %46 = dma.hbm_to_vmem [thread:$0]  %s3069_s2, 10240, %s2933_s23, [#allocation5], %s2870_s0, %s2870_s0, %s2871_s16  }
  0x45   :  { %s2872_s18 = smov [#allocation9]   ;;  %s2834_s22 = scalar_lea.hbm %s3071_s4, 1024 }
  0x46   :  { %s64_s19 = sshll.u32 %s2872_s18, 4  ;;  %p2835_p4 = scmp.ne.s32.totalorder %s3071_s4, %s2834_s22  ;;  %s65_s19 = int_to_ptr.vmem [resolvable:$true] %s64_s19 }
  0x47   :  { %p2838_p5 = scmp.lt.u32.totalorder %s2834_s22, %s3071_s4 }
  0x49   :  { %p2840_p6 = pnand %p2838_p5, %p2835_p4 }
  0x4b   :  { %2843 = shalt.err (!%p2840_p6)
}
  0x4c   :  { %s2844_s28 = scalar_lea.vmem %s65_s19, 1024  ;;  %p2849_p8 = scmp.lt.s32.totalorder %s65_s19, %s65_s19 }
  0x4d   :  { %p2845_p7 = scmp.ne.s32.totalorder %s65_s19, %s2844_s28  ;;  %p2850_p9 = scmp.lt.s32.totalorder %s2844_s28, %s2844_s28 }
  0x4f   :  { %p2851_p10 = por %p2850_p9, %p2849_p8 }
  0x51   :  { %p2852_p11 = pnand %p2851_p10, %p2845_p7 }
  0x53   :  { %2855 = shalt.err (!%p2852_p11)
}
  0x54   :  { %s2873_s2 = smov 512   ;;  %s2874_s23 = smov 32  }
  0x55   :  { %70 = dma.hbm_to_vmem [thread:$0]  %s3071_s4, 1024, %s65_s19, [#allocation8], %s2873_s2, %s2873_s2, %s2874_s23  }
  0x56   :  { %2856 = dma.done.wait [#allocation3], 128  }
  0x57   :  { %2857 = vsyncadd [#allocation3], 4294967168 }
  0x58   :  { %2858 = dma.done.wait [#allocation5], 15488  }
  0x59   :  { %2859 = vsyncadd [#allocation5], 4294951808 }
  0x5a   :  { %2860 = dma.done.wait [#allocation8], 9216  }
  0x5b   :  { %2861 = vsyncadd [#allocation8], 4294958080  ;;  %v2875_v0 = vmov 0.0   ;;  %vm2876_vm0 = vmmov 0   ;;  %v2465_v1 = vld [vmem:[#allocation4] sm:$0xff]   ;;  %v87_v2 = vld [vmem:[#allocation2] sm:$0xff] }
  0x5c   :  { %2378 = vmatprep.subr.bf16.mxu0 %v2875_v0  ;;  %2380 = vmatprep.mubr.msk.bf16.mxu0 %vm2876_vm0, %v2875_v0  ;;  %vm97_vm1 = vcmask 130048   ;;  %v88_v3 = vpack.c.bf16 %v87_v2, %v87_v2  ;;  %v2466_v4 = vld [vmem:[#allocation4 + $0x8] sm:$0xff]   ;;  %v2467_v5 = vld [vmem:[#allocation4 + $0x10] sm:$0xff]   ;;  %v2468_v6 = vld [vmem:[#allocation4 + $0x18] sm:$0xff]   ;;  %v2877_v57 = vmov 0  }
  0x5d   :  { %2384 = vmatprep.subr.bf16.mxu1 %v2875_v0  ;;  %2400 = vmatprep.mubr.msk.bf16.mxu1 %vm2876_vm0, %v2875_v0  ;;  %v2469_v7 = vld [vmem:[#allocation4 + $0x20] sm:$0xff]   ;;  %v2470_v8 = vld [vmem:[#allocation4 + $0x28] sm:$0xff]   ;;  %v2471_v9 = vld [vmem:[#allocation4 + $0x30] sm:$0xff]  }
  0x5e   :  { %2379 = vmatpush3.bf16.msra.mxu0 %v2465_v1  ;;  %2385 = vmatpush3.bf16.msra.mxu1 %v2466_v4  ;;  %v2472_v10 = vld [vmem:[#allocation4 + $0x38] sm:$0xff]   ;;  %v2473_v11 = vld [vmem:[#allocation4 + $0x40] sm:$0xff]   ;;  %v157_v33 = vld [vmem:[#allocation9] ss:$0 sm:$0xff] }
  0x5f   :  { %2386 = vmatprep.subr.bf16.mxu1 %v2875_v0  ;;  %v158_v36 = vld [vmem:[#allocation9 + $0x1] ss:$0 sm:$0xff]  ;;  %v2476_v41 = vld [vmem:[#allocation6 + $0x4] ss:$8 sps:$4 sm:$0xff]   ;;  %v2479_v43 = vld [vmem:[#allocation6 + $0x14] ss:$8 sps:$4 sm:$0xff]  }
  0x60   :  { %v2474_v42 = vld [vmem:[#allocation6] ss:$8 sps:$4 sm:$0xff]   ;;  %391 = vmatprep.subr.bf16.mxu0 %v2476_v41  ;;  %v2477_v44 = vld [vmem:[#allocation6 + $0x10] ss:$8 sps:$4 sm:$0xff]   ;;  %v2482_v45 = vld [vmem:[#allocation6 + $0x24] ss:$8 sps:$4 sm:$0xff]  }
  0x61   :  { %2381 = vmatmul.mubr.msk.bf16.vlgmr.msra.gmra.mrb[0].mxu0 %vm97_vm1, %v88_v3  ;;  %v2480_v46 = vld [vmem:[#allocation6 + $0x20] ss:$8 sps:$4 sm:$0xff]   ;;  %v2485_v47 = vld [vmem:[#allocation6 + $0x34] ss:$8 sps:$4 sm:$0xff]   ;;  %v2483_v48 = vld [vmem:[#allocation6 + $0x30] ss:$8 sps:$4 sm:$0xff]  }
  0x62   :  { %2387 = vmatpush3.bf16.msra.mxu1 %v2467_v5  ;;  %392 = vmatpush1.bf16.msra.mxu0 %v2474_v42  ;;  %v2488_v49 = vld [vmem:[#allocation6 + $0x44] ss:$8 sps:$4 sm:$0xff]   ;;  %v2486_v50 = vld [vmem:[#allocation6 + $0x40] ss:$8 sps:$4 sm:$0xff]   ;;  %v2491_v51 = vld [vmem:[#allocation6 + $0x54] ss:$8 sps:$4 sm:$0xff]  }
  0x63   :  { %2388 = vmatprep.subr.bf16.mxu1 %v2875_v0  ;;  %393 = vmatprep.subr.bf16.mxu0 %v2479_v43  ;;  %v2489_v52 = vld [vmem:[#allocation6 + $0x50] ss:$8 sps:$4 sm:$0xff]   ;;  %v2494_v53 = vld [vmem:[#allocation6 + $0x64] ss:$8 sps:$4 sm:$0xff]   ;;  %v2492_v54 = vld [vmem:[#allocation6 + $0x60] ss:$8 sps:$4 sm:$0xff]  }
  0x64   :  { %v2495_v55 = vld [vmem:[#allocation6 + $0x70] ss:$8 sps:$4 sm:$0xff]   ;;  %v2497_v56 = vld [vmem:[#allocation6 + $0x74] ss:$8 sps:$4 sm:$0xff]   ;;  %423 = vmatprep.mubr.bf16.mxu0 %v2877_v57 }
  0x65   :  { %v2527_v41 = vld [vmem:[#allocation7 + $0x8c] ss:$16 sps:$4 sm:$0xff]   ;;  %v2522_v42 = vld [vmem:[#allocation7 + $0x80] ss:$16 sps:$4 sm:$0xff]   ;;  %v2525_v43 = vld [vmem:[#allocation7 + $0x88] ss:$16 sps:$4 sm:$0xff]  }
  0x66   :  { %2389 = vmatpush3.bf16.msra.mxu1 %v2468_v6  ;;  %394 = vmatpush1.bf16.msra.mxu0 %v2477_v44  ;;  %v2530_v44 = vld [vmem:[#allocation7 + $0xa4] ss:$16 sps:$4 sm:$0xff]   ;;  %v2551_v57 = vld [vmem:[#allocation7 + $0x10c] ss:$16 sps:$4 sm:$0xff]  }
  0x67   :  { %2390 = vmatprep.subr.bf16.mxu1 %v2875_v0  ;;  %395 = vmatprep.subr.bf16.mxu0 %v2482_v45  ;;  %v2533_v45 = vld [vmem:[#allocation7 + $0xac] ss:$16 sps:$4 sm:$0xff]  }
  0x6a   :  { %2391 = vmatpush3.bf16.msra.mxu1 %v2469_v7  ;;  %396 = vmatpush1.bf16.msra.mxu0 %v2480_v46  ;;  %v2528_v46 = vld [vmem:[#allocation7 + $0xa0] ss:$16 sps:$4 sm:$0xff]  }
  0x6b   :  { %2392 = vmatprep.subr.bf16.mxu1 %v2875_v0  ;;  %397 = vmatprep.subr.bf16.mxu0 %v2485_v47  ;;  %v2531_v47 = vld [vmem:[#allocation7 + $0xa8] ss:$16 sps:$4 sm:$0xff]  }
  0x6e   :  { %2393 = vmatpush3.bf16.msra.mxu1 %v2470_v8  ;;  %398 = vmatpush1.bf16.msra.mxu0 %v2483_v48  ;;  %v2536_v48 = vld [vmem:[#allocation7 + $0xc4] ss:$16 sps:$4 sm:$0xff]  }
  0x6f   :  { %2394 = vmatprep.subr.bf16.mxu1 %v2875_v0  ;;  %399 = vmatprep.subr.bf16.mxu0 %v2488_v49  ;;  %v2539_v49 = vld [vmem:[#allocation7 + $0xcc] ss:$16 sps:$4 sm:$0xff]  }
  0x72   :  { %2395 = vmatpush3.bf16.msra.mxu1 %v2471_v9  ;;  %400 = vmatpush1.bf16.msra.mxu0 %v2486_v50  ;;  %v2534_v50 = vld [vmem:[#allocation7 + $0xc0] ss:$16 sps:$4 sm:$0xff]  }
  0x73   :  { %2396 = vmatprep.subr.bf16.mxu1 %v2875_v0  ;;  %401 = vmatprep.subr.bf16.mxu0 %v2491_v51  ;;  %v2537_v51 = vld [vmem:[#allocation7 + $0xc8] ss:$16 sps:$4 sm:$0xff]  }
  0x76   :  { %2397 = vmatpush3.bf16.msra.mxu1 %v2472_v10  ;;  %402 = vmatpush1.bf16.msra.mxu0 %v2489_v52  ;;  %v2542_v52 = vld [vmem:[#allocation7 + $0xe4] ss:$16 sps:$4 sm:$0xff]  }
  0x77   :  { %2398 = vmatprep.subr.bf16.mxu1 %v2875_v0  ;;  %403 = vmatprep.subr.bf16.mxu0 %v2494_v53  ;;  %v2545_v53 = vld [vmem:[#allocation7 + $0xec] ss:$16 sps:$4 sm:$0xff]  }
  0x7a   :  { %2399 = vmatpush3.bf16.msra.mxu1 %v2473_v11  ;;  %404 = vmatpush1.bf16.msra.mxu0 %v2492_v54  ;;  %v2540_v54 = vld [vmem:[#allocation7 + $0xe0] ss:$16 sps:$4 sm:$0xff]  }
  0x7b   :  { %405 = vmatprep.subr.bf16.mxu0 %v2497_v56  ;;  %v2548_v56 = vld [vmem:[#allocation7 + $0x104] ss:$16 sps:$4 sm:$0xff]  }
  0x7e   :  { %406 = vmatpush1.bf16.msra.mxu0 %v2495_v55  ;;  %v2543_v55 = vld [vmem:[#allocation7 + $0xe8] ss:$16 sps:$4 sm:$0xff]  }
 0x134   :  { %v135_v12 = vpop.f32.mrb[0].mxu0 }
 0x135   :  { %v141_v13 = vrot.slane %v135_v12, 4  ;;  %v2382_v14 = vpop.f32.mrb[1].mxu0 }
 0x136   :  { %v138_v15 = vpop.f32.mrb[2].mxu0 }
 0x137   :  { %v142_v16 = vadd.f32 %v141_v13, %v135_v12  ;;  %v2383_v17 = vpop.f32.mrb[3].mxu0 }
 0x139   :  { %v143_v18 = vrot.slane %v142_v16, 2 }
 0x13b   :  { %v144_v19 = vadd.f32 %v143_v18, %v142_v16  ;;  %v286_v16 = vld [vmem:[#allocation9 + $0x2] ss:$0 sm:$0xff] }
 0x13d   :  { %v145_v20 = vrot.slane %v144_v19, 1 }
 0x13f   :  { %v146_v21 = vadd.f32 %v145_v20, %v144_v19  ;;  %v287_v19 = vld [vmem:[#allocation9 + $0x3] ss:$0 sm:$0xff] }
 0x141   :  { %v147_v22 = vmul.f32 0.125, %v146_v21 }
 0x143   :  { %v148_v23 = vsub.f32 %v135_v12, %v147_v22 }
 0x145   :  { %v149_v24 = vmul.f32 %v148_v23, %v148_v23 }
 0x147   :  { %v150_v25 = vrot.slane %v149_v24, 4 }
 0x149   :  { %v151_v26 = vadd.f32 %v150_v25, %v149_v24  ;;  %v2500_v24 = vld [vmem:[#allocation7 + $0x4] ss:$16 sps:$4 sm:$0xff]   ;;  %v2503_v25 = vld [vmem:[#allocation7 + $0xc] ss:$16 sps:$4 sm:$0xff]  }
 0x14a   :  { %905 = vmatprep.subr.bf16.mxu1 %v2500_v24  ;;  %946 = vmatprep.subr.bf16.mxu0 %v2503_v25  ;;  %v2591_v24 = vld [vmem:[#allocation7 + $0x1e8] ss:$16 sps:$4 sm:$0xff]  }
 0x14b   :  { %v152_v27 = vrot.slane %v151_v26, 2 }
 0x14d   :  { %v153_v28 = vadd.f32 %v152_v27, %v151_v26  ;;  %v2498_v26 = vld [vmem:[#allocation7] ss:$16 sps:$4 sm:$0xff]   ;;  %v2501_v27 = vld [vmem:[#allocation7 + $0x8] ss:$16 sps:$4 sm:$0xff]  }
 0x14f   :  { %v154_v29 = vrot.slane %v153_v28, 1 }
 0x151   :  { %v155_v30 = vadd.f32 %v154_v29, %v153_v28  ;;  %v2506_v28 = vld [vmem:[#allocation7 + $0x24] ss:$16 sps:$4 sm:$0xff]   ;;  %v2509_v29 = vld [vmem:[#allocation7 + $0x2c] ss:$16 sps:$4 sm:$0xff]  }
 0x153   :  { %v156_v31 = vmul.f32 0.125, %v155_v30  ;;  %v2504_v30 = vld [vmem:[#allocation7 + $0x20] ss:$16 sps:$4 sm:$0xff]  }
 0x155   :  { %v159_v32 = vadd.f32 1e-05, %v156_v31  ;;  %v2507_v31 = vld [vmem:[#allocation7 + $0x28] ss:$16 sps:$4 sm:$0xff]  }
 0x157   :  { %2722 = vrsqrt.f32 %v159_v32  ;;  %v2512_v32 = vld [vmem:[#allocation7 + $0x44] ss:$16 sps:$4 sm:$0xff]  }
 0x161   :  { %v2723_v34 = vpop.eup %2722 }
 0x162   :  { %v161_v35 = vmul.f32 %v2723_v34, %v157_v33  ;;  %v2515_v33 = vld [vmem:[#allocation7 + $0x4c] ss:$16 sps:$4 sm:$0xff]   ;;  %v2510_v34 = vld [vmem:[#allocation7 + $0x40] ss:$16 sps:$4 sm:$0xff]  }
 0x164   :  { %v162_v37 = vmul.f32 %v161_v35, %v148_v23  ;;  %v2513_v35 = vld [vmem:[#allocation7 + $0x48] ss:$16 sps:$4 sm:$0xff]  }
 0x166   :  { %v163_v38 = vadd.f32 %v162_v37, %v158_v36  ;;  %v2518_v36 = vld [vmem:[#allocation7 + $0x64] ss:$16 sps:$4 sm:$0xff]   ;;  %v2521_v37 = vld [vmem:[#allocation7 + $0x6c] ss:$16 sps:$4 sm:$0xff]  }
 0x168   :  { %v164_v39 = vmax.f32 %v163_v38, 0.0  ;;  %v2516_v38 = vld [vmem:[#allocation7 + $0x60] ss:$16 sps:$4 sm:$0xff]  }
 0x16a   :  { %v165_v40 = vpack.c.bf16 %v164_v39, %v164_v39  ;;  %v2519_v39 = vld [vmem:[#allocation7 + $0x68] ss:$16 sps:$4 sm:$0xff]  }
 0x16c   :  { %2401 = vmatmul.mubr.bf16.vlgmr.msra.gmra.mrb[0].mxu1 %v165_v40  ;;  %v2524_v40 = vld [vmem:[#allocation7 + $0x84] ss:$16 sps:$4 sm:$0xff]  }
 0x16d   :  { %906 = vmatpush1.bf16.msra.mxu1 %v2498_v26 }
 0x16e   :  { %907 = vmatprep.subr.bf16.mxu1 %v2506_v28 }
 0x171   :  { %908 = vmatpush1.bf16.msra.mxu1 %v2504_v30 }
 0x172   :  { %909 = vmatprep.subr.bf16.mxu1 %v2512_v32 }
 0x175   :  { %910 = vmatpush1.bf16.msra.mxu1 %v2510_v34 }
 0x176   :  { %911 = vmatprep.subr.bf16.mxu1 %v2518_v36 }
 0x179   :  { %912 = vmatpush1.bf16.msra.mxu1 %v2516_v38 }
 0x17a   :  { %913 = vmatprep.subr.bf16.mxu1 %v2524_v40 }
 0x17d   :  { %914 = vmatpush1.bf16.msra.mxu1 %v2522_v42 }
 0x17e   :  { %915 = vmatprep.subr.bf16.mxu1 %v2530_v44 }
 0x181   :  { %916 = vmatpush1.bf16.msra.mxu1 %v2528_v46 }
 0x182   :  { %917 = vmatprep.subr.bf16.mxu1 %v2536_v48 }
 0x185   :  { %918 = vmatpush1.bf16.msra.mxu1 %v2534_v50 }
 0x186   :  { %919 = vmatprep.subr.bf16.mxu1 %v2542_v52 }
 0x189   :  { %920 = vmatpush1.bf16.msra.mxu1 %v2540_v54 }
 0x18a   :  { %921 = vmatprep.subr.bf16.mxu1 %v2548_v56 }
 0x23f   :  { %v264_v58 = vpop.f32.mrb[0].mxu1 }
 0x240   :  { %v270_v59 = vrot.slane %v264_v58, 4  ;;  %v2402_v60 = vpop.f32.mrb[1].mxu1 }
 0x241   :  { %v267_v61 = vpop.f32.mrb[2].mxu1  ;;  %v2554_v60 = vld [vmem:[#allocation7 + $0x124] ss:$16 sps:$4 sm:$0xff]  }
 0x242   :  { %v271_v62 = vadd.f32 %v270_v59, %v264_v58  ;;  %v2403_v63 = vpop.f32.mrb[3].mxu1  ;;  %v2549_v59 = vld [vmem:[#allocation7 + $0x108] ss:$16 sps:$4 sm:$0xff]   ;;  %v2557_v61 = vld [vmem:[#allocation7 + $0x12c] ss:$16 sps:$4 sm:$0xff]  }
 0x243   :  { %v2555_v63 = vld [vmem:[#allocation7 + $0x128] ss:$16 sps:$4 sm:$0xff]  }
 0x244   :  { %v272_v1 = vrot.slane %v271_v62, 2 }
 0x246   :  { %v273_v2 = vadd.f32 %v272_v1, %v271_v62  ;;  %v2552_v62 = vld [vmem:[#allocation7 + $0x120] ss:$16 sps:$4 sm:$0xff]   ;;  %v2560_v1 = vld [vmem:[#allocation7 + $0x144] ss:$16 sps:$4 sm:$0xff]  }
 0x248   :  { %v274_v3 = vrot.slane %v273_v2, 1 }
 0x24a   :  { %v275_v4 = vadd.f32 %v274_v3, %v273_v2  ;;  %v2563_v2 = vld [vmem:[#allocation7 + $0x14c] ss:$16 sps:$4 sm:$0xff]   ;;  %v2558_v3 = vld [vmem:[#allocation7 + $0x140] ss:$16 sps:$4 sm:$0xff]  }
 0x24c   :  { %v276_v5 = vmul.f32 0.125, %v275_v4  ;;  %v2561_v4 = vld [vmem:[#allocation7 + $0x148] ss:$16 sps:$4 sm:$0xff]  }
 0x24e   :  { %v277_v6 = vsub.f32 %v264_v58, %v276_v5  ;;  %v2546_v58 = vld [vmem:[#allocation7 + $0x100] ss:$16 sps:$4 sm:$0xff]   ;;  %v2566_v5 = vld [vmem:[#allocation7 + $0x164] ss:$16 sps:$4 sm:$0xff]  }
 0x24f   :  { %922 = vmatpush1.bf16.msra.mxu1 %v2546_v58 }
 0x250   :  { %v278_v7 = vmul.f32 %v277_v6, %v277_v6  ;;  %923 = vmatprep.subr.bf16.mxu1 %v2554_v60 }
 0x252   :  { %v279_v8 = vrot.slane %v278_v7, 4 }
 0x253   :  { %924 = vmatpush1.bf16.msra.mxu1 %v2552_v62 }
 0x254   :  { %v280_v9 = vadd.f32 %v279_v8, %v278_v7  ;;  %925 = vmatprep.subr.bf16.mxu1 %v2560_v1  ;;  %v2564_v7 = vld [vmem:[#allocation7 + $0x160] ss:$16 sps:$4 sm:$0xff]   ;;  %v2567_v8 = vld [vmem:[#allocation7 + $0x168] ss:$16 sps:$4 sm:$0xff]  }
 0x256   :  { %v281_v10 = vrot.slane %v280_v9, 2 }
 0x257   :  { %926 = vmatpush1.bf16.msra.mxu1 %v2558_v3 }
 0x258   :  { %v282_v11 = vadd.f32 %v281_v10, %v280_v9  ;;  %927 = vmatprep.subr.bf16.mxu1 %v2566_v5  ;;  %v2572_v9 = vld [vmem:[#allocation7 + $0x184] ss:$16 sps:$4 sm:$0xff]   ;;  %v2575_v10 = vld [vmem:[#allocation7 + $0x18c] ss:$16 sps:$4 sm:$0xff]  }
 0x25a   :  { %v283_v12 = vrot.slane %v282_v11, 1 }
 0x25b   :  { %928 = vmatpush1.bf16.msra.mxu1 %v2564_v7 }
 0x25c   :  { %v284_v13 = vadd.f32 %v283_v12, %v282_v11  ;;  %v2570_v11 = vld [vmem:[#allocation7 + $0x180] ss:$16 sps:$4 sm:$0xff]   ;;  %v2573_v12 = vld [vmem:[#allocation7 + $0x188] ss:$16 sps:$4 sm:$0xff]   ;;  %929 = vmatprep.subr.bf16.mxu1 %v2572_v9 }
 0x25e   :  { %v285_v14 = vmul.f32 0.125, %v284_v13  ;;  %v2578_v13 = vld [vmem:[#allocation7 + $0x1a4] ss:$16 sps:$4 sm:$0xff]  }
 0x25f   :  { %930 = vmatpush1.bf16.msra.mxu1 %v2570_v11 }
 0x260   :  { %v288_v15 = vadd.f32 1e-05, %v285_v14  ;;  %v2581_v14 = vld [vmem:[#allocation7 + $0x1ac] ss:$16 sps:$4 sm:$0xff]   ;;  %931 = vmatprep.subr.bf16.mxu1 %v2578_v13 }
 0x262   :  { %2724 = vrsqrt.f32 %v288_v15  ;;  %v2576_v15 = vld [vmem:[#allocation7 + $0x1a0] ss:$16 sps:$4 sm:$0xff]  }
 0x263   :  { %932 = vmatpush1.bf16.msra.mxu1 %v2576_v15 }
 0x26c   :  { %v2725_v17 = vpop.eup %2724 }
 0x26d   :  { %v290_v18 = vmul.f32 %v2725_v17, %v286_v16  ;;  %v2579_v16 = vld [vmem:[#allocation7 + $0x1a8] ss:$16 sps:$4 sm:$0xff]   ;;  %v2584_v17 = vld [vmem:[#allocation7 + $0x1c4] ss:$16 sps:$4 sm:$0xff]  }
 0x26e   :  { %933 = vmatprep.subr.bf16.mxu1 %v2584_v17 }
 0x26f   :  { %v291_v20 = vmul.f32 %v290_v18, %v277_v6  ;;  %v2569_v6 = vld [vmem:[#allocation7 + $0x16c] ss:$16 sps:$4 sm:$0xff]  }
 0x270   :  { %v2587_v18 = vld [vmem:[#allocation7 + $0x1cc] ss:$16 sps:$4 sm:$0xff]  }
 0x271   :  { %v292_v21 = vadd.f32 %v291_v20, %v287_v19  ;;  %v2582_v19 = vld [vmem:[#allocation7 + $0x1c0] ss:$16 sps:$4 sm:$0xff]   ;;  %v2585_v20 = vld [vmem:[#allocation7 + $0x1c8] ss:$16 sps:$4 sm:$0xff]  }
 0x272   :  { %934 = vmatpush1.bf16.msra.mxu1 %v2582_v19 }
 0x273   :  { %v293_v22 = vmax.f32 %v292_v21, 0.0  ;;  %v2590_v21 = vld [vmem:[#allocation7 + $0x1e4] ss:$16 sps:$4 sm:$0xff]  }
 0x274   :  { %935 = vmatprep.subr.bf16.mxu1 %v2590_v21 }
 0x275   :  { %v294_v23 = vpack.c.bf16 %v293_v22, %v293_v22  ;;  %v2593_v22 = vld [vmem:[#allocation7 + $0x1ec] ss:$16 sps:$4 sm:$0xff]  }
 0x277   :  { %424 = vmatmul.mubr.bf16.vlgmr.msra.gmra.mrb[4].mxu0 %v294_v23  ;;  %v2588_v23 = vld [vmem:[#allocation7 + $0x1e0] ss:$16 sps:$4 sm:$0xff]  }
 0x278   :  { %947 = vmatpush1.bf16.msra.mxu0 %v2501_v27  ;;  %936 = vmatpush1.bf16.msra.mxu1 %v2588_v23 }
 0x279   :  { %948 = vmatprep.subr.bf16.mxu0 %v2509_v29 }
 0x27c   :  { %949 = vmatpush1.bf16.msra.mxu0 %v2507_v31 }
 0x27d   :  { %950 = vmatprep.subr.bf16.mxu0 %v2515_v33 }
 0x280   :  { %951 = vmatpush1.bf16.msra.mxu0 %v2513_v35 }
 0x281   :  { %952 = vmatprep.subr.bf16.mxu0 %v2521_v37 }
 0x284   :  { %953 = vmatpush1.bf16.msra.mxu0 %v2519_v39 }
 0x285   :  { %954 = vmatprep.subr.bf16.mxu0 %v2527_v41 }
 0x288   :  { %955 = vmatpush1.bf16.msra.mxu0 %v2525_v43 }
 0x289   :  { %956 = vmatprep.subr.bf16.mxu0 %v2533_v45 }
 0x28c   :  { %957 = vmatpush1.bf16.msra.mxu0 %v2531_v47 }
 0x28d   :  { %958 = vmatprep.subr.bf16.mxu0 %v2539_v49 }
 0x290   :  { %959 = vmatpush1.bf16.msra.mxu0 %v2537_v51 }
 0x291   :  { %960 = vmatprep.subr.bf16.mxu0 %v2545_v53 }
 0x294   :  { %961 = vmatpush1.bf16.msra.mxu0 %v2543_v55 }
 0x295   :  { %962 = vmatprep.subr.bf16.mxu0 %v2551_v57 }
 0x298   :  { %963 = vmatpush1.bf16.msra.mxu0 %v2549_v59 }
 0x299   :  { %964 = vmatprep.subr.bf16.mxu0 %v2557_v61 }
 0x29c   :  { %965 = vmatpush1.bf16.msra.mxu0 %v2555_v63  ;;  %v2878_v63 = vmov 1966171168  }
 0x29d   :  { %966 = vmatprep.subr.bf16.mxu0 %v2563_v2  ;;  %v476_v1 = vunpack.c.l.s4 %v2878_v63  ;;  %v478_v2 = vlaneseq }
 0x29f   :  { %v477_v3 = vunpack.c.0.s8 %v476_v1 }
 0x2a0   :  { %967 = vmatpush1.bf16.msra.mxu0 %v2561_v4  ;;  %v2989_v4 = vshrl.u32 %v478_v2, 7 }
 0x2a1   :  { %968 = vmatprep.subr.bf16.mxu0 %v2569_v6 }
 0x2a2   :  { %v2992_v6 = vsub.s32 %v477_v3, %v2989_v4  ;;  %v3000_v13 = vsub.s32 1, %v2989_v4 }
 0x2a4   :  { %969 = vmatpush1.bf16.msra.mxu0 %v2567_v8 }
 0x2a5   :  { %970 = vmatprep.subr.bf16.mxu0 %v2575_v10  ;;  %v465_v10 = vld [vmem:[#allocation9 + $0x4] ss:$8 sm:$0x3] }
 0x2a8   :  { %971 = vmatpush1.bf16.msra.mxu0 %v2573_v12  ;;  %v2997_v12 = vsub.s32 0, %v2989_v4 }
 0x2a9   :  { %972 = vmatprep.subr.bf16.mxu0 %v2581_v14  ;;  %v467_v14 = vld [vmem:[#allocation9 + $0x5] ss:$8 sm:$0x3] }
 0x2aa   :  { %v512_v19 = vrot.slane %v467_v14, %v3000_v13 }
 0x2ac   :  { %973 = vmatpush1.bf16.msra.mxu0 %v2579_v16 }
 0x2ad   :  { %974 = vmatprep.subr.bf16.mxu0 %v2587_v18  ;;  %v508_v18 = vrot.slane %v467_v14, %v2997_v12 }
 0x2b0   :  { %975 = vmatpush1.bf16.msra.mxu0 %v2585_v20 }
 0x2b1   :  { %976 = vmatprep.subr.bf16.mxu0 %v2593_v22 }
 0x2b4   :  { %977 = vmatpush1.bf16.msra.mxu0 %v2591_v24 }
 0x34a   :  { %v425_v25 = vpop.f32.mrb[4].mxu0 }
 0x34b   :  { %v432_v26 = vrot.slane %v425_v25, 4  ;;  %v427_v27 = vpop.f32.mrb[5].mxu0 }
 0x34c   :  { %v438_v28 = vrot.slane %v427_v27, 4  ;;  %v429_v29 = vpop.f32.mrb[6].mxu0 }
 0x34d   :  { %v433_v30 = vadd.f32 %v432_v26, %v425_v25  ;;  %v430_v31 = vpop.f32.mrb[7].mxu0  ;;  %v2594_v29 = vld [vmem:[#allocation6 + $0x80] ss:$8 sps:$4 sm:$0xff]  }
 0x34e   :  { %v439_v32 = vadd.f32 %v438_v28, %v427_v27  ;;  %v2596_v28 = vld [vmem:[#allocation6 + $0x84] ss:$8 sps:$4 sm:$0xff]   ;;  %v2597_v31 = vld [vmem:[#allocation6 + $0x90] ss:$8 sps:$4 sm:$0xff]  }
 0x34f   :  { %v434_v33 = vrot.slane %v433_v30, 2  ;;  %1535 = vmatprep.subr.bf16.mxu1 %v2596_v28 }
 0x350   :  { %v440_v34 = vrot.slane %v439_v32, 2 }
 0x351   :  { %v435_v35 = vadd.f32 %v434_v33, %v433_v30  ;;  %v2599_v30 = vld [vmem:[#allocation6 + $0x94] ss:$8 sps:$4 sm:$0xff]   ;;  %v2600_v33 = vld [vmem:[#allocation6 + $0xa0] ss:$8 sps:$4 sm:$0xff]  }
 0x352   :  { %v441_v36 = vadd.f32 %v440_v34, %v439_v32  ;;  %v2602_v32 = vld [vmem:[#allocation6 + $0xa4] ss:$8 sps:$4 sm:$0xff]   ;;  %v2605_v34 = vld [vmem:[#allocation6 + $0xb4] ss:$8 sps:$4 sm:$0xff]  }
 0x353   :  { %v436_v37 = vrot.slane %v435_v35, 1 }
 0x354   :  { %v442_v38 = vrot.slane %v441_v36, 1 }
 0x355   :  { %v437_v39 = vadd.f32 %v436_v37, %v435_v35  ;;  %v2603_v35 = vld [vmem:[#allocation6 + $0xb0] ss:$8 sps:$4 sm:$0xff]   ;;  %v2606_v37 = vld [vmem:[#allocation6 + $0xc0] ss:$8 sps:$4 sm:$0xff]  }
 0x356   :  { %v443_v40 = vadd.f32 %v442_v38, %v441_v36  ;;  %v2608_v36 = vld [vmem:[#allocation6 + $0xc4] ss:$8 sps:$4 sm:$0xff]   ;;  %v2611_v38 = vld [vmem:[#allocation6 + $0xd4] ss:$8 sps:$4 sm:$0xff]  }
 0x357   :  { %v444_v41 = vmul.f32 0.125, %v437_v39  ;;  %v2609_v39 = vld [vmem:[#allocation6 + $0xd0] ss:$8 sps:$4 sm:$0xff]  }
 0x358   :  { %v445_v42 = vmul.f32 0.125, %v443_v40  ;;  %v2614_v40 = vld [vmem:[#allocation6 + $0xe4] ss:$8 sps:$4 sm:$0xff]  }
 0x359   :  { %v446_v43 = vsub.f32 %v425_v25, %v444_v41  ;;  %v2612_v41 = vld [vmem:[#allocation6 + $0xe0] ss:$8 sps:$4 sm:$0xff]  }
 0x35a   :  { %v447_v44 = vsub.f32 %v427_v27, %v445_v42  ;;  %v2617_v42 = vld [vmem:[#allocation6 + $0xf4] ss:$8 sps:$4 sm:$0xff]  }
 0x35b   :  { %v448_v45 = vmul.f32 %v446_v43, %v446_v43 }
 0x35c   :  { %v449_v46 = vmul.f32 %v447_v44, %v447_v44 }
 0x35d   :  { %v450_v47 = vrot.slane %v448_v45, 4 }
 0x35e   :  { %v456_v48 = vrot.slane %v449_v46, 4 }
 0x35f   :  { %v451_v49 = vadd.f32 %v450_v47, %v448_v45  ;;  %v2618_v45 = vld [vmem:[#allocation6 + $0x100] ss:$8 sps:$4 sm:$0xff]   ;;  %v2621_v47 = vld [vmem:[#allocation6 + $0x110] ss:$8 sps:$4 sm:$0xff]  }
 0x360   :  { %v457_v50 = vadd.f32 %v456_v48, %v449_v46  ;;  %v2623_v46 = vld [vmem:[#allocation6 + $0x114] ss:$8 sps:$4 sm:$0xff]   ;;  %v2626_v48 = vld [vmem:[#allocation6 + $0x124] ss:$8 sps:$4 sm:$0xff]  }
 0x361   :  { %v452_v51 = vrot.slane %v451_v49, 2 }
 0x362   :  { %v458_v52 = vrot.slane %v457_v50, 2 }
 0x363   :  { %v453_v53 = vadd.f32 %v452_v51, %v451_v49  ;;  %v2624_v49 = vld [vmem:[#allocation6 + $0x120] ss:$8 sps:$4 sm:$0xff]   ;;  %v2627_v51 = vld [vmem:[#allocation6 + $0x130] ss:$8 sps:$4 sm:$0xff]  }
 0x364   :  { %v459_v54 = vadd.f32 %v458_v52, %v457_v50  ;;  %v2629_v50 = vld [vmem:[#allocation6 + $0x134] ss:$8 sps:$4 sm:$0xff]   ;;  %v2632_v52 = vld [vmem:[#allocation6 + $0x144] ss:$8 sps:$4 sm:$0xff]  }
 0x365   :  { %v454_v55 = vrot.slane %v453_v53, 1 }
 0x366   :  { %v460_v56 = vrot.slane %v459_v54, 1 }
 0x367   :  { %v455_v57 = vadd.f32 %v454_v55, %v453_v53  ;;  %v2630_v53 = vld [vmem:[#allocation6 + $0x140] ss:$8 sps:$4 sm:$0xff]   ;;  %v2633_v55 = vld [vmem:[#allocation6 + $0x150] ss:$8 sps:$4 sm:$0xff]  }
 0x368   :  { %v461_v58 = vadd.f32 %v460_v56, %v459_v54  ;;  %v2635_v54 = vld [vmem:[#allocation6 + $0x154] ss:$8 sps:$4 sm:$0xff]   ;;  %v2638_v56 = vld [vmem:[#allocation6 + $0x164] ss:$8 sps:$4 sm:$0xff]  }
 0x369   :  { %v462_v59 = vmul.f32 0.125, %v455_v57  ;;  %v2636_v57 = vld [vmem:[#allocation6 + $0x160] ss:$8 sps:$4 sm:$0xff]  }
 0x36a   :  { %v463_v60 = vmul.f32 0.125, %v461_v58  ;;  %v2641_v58 = vld [vmem:[#allocation6 + $0x174] ss:$8 sps:$4 sm:$0xff]  }
 0x36b   :  { %v468_v61 = vadd.f32 1e-05, %v462_v59  ;;  %v2639_v59 = vld [vmem:[#allocation6 + $0x170] ss:$8 sps:$4 sm:$0xff]  }
 0x36c   :  { %v469_v62 = vadd.f32 1e-05, %v463_v60  ;;  %v2644_v60 = vld [vmem:[#allocation6 + $0x184] ss:$8 sps:$4 sm:$0xff]  }
 0x36d   :  { %2726 = vrsqrt.f32 %v468_v61 }
 0x36e   :  { %2728 = vrsqrt.f32 %v469_v62 }
 0x377   :  { %v2727_v5 = vpop.eup %2726 }
 0x378   :  { %v2729_v7 = vpop.eup %2728 }
 0x379   :  { %v474_v8 = vcombine.low %v2727_v5, %v2729_v7 }
 0x37b   :  { %v481_v9 = vrot.slane %v474_v8, %v2992_v6 }
 0x37d   :  { %v488_v11 = vrot.slane %v481_v9, %v2992_v6 }
 0x37f   :  { %v490_v15 = vmul.f32 %v488_v11, %v465_v10 }
 0x381   :  { %v495_v16 = vrot.slane %v490_v15, %v2997_v12  ;;  %v499_v17 = vrot.slane %v490_v15, %v3000_v13 }
 0x383   :  { %v503_v20 = vmul.f32 %v499_v17, %v447_v44  ;;  %v502_v21 = vmul.f32 %v495_v16, %v446_v43  ;;  %v2615_v43 = vld [vmem:[#allocation6 + $0xf0] ss:$8 sps:$4 sm:$0xff]   ;;  %v2620_v44 = vld [vmem:[#allocation6 + $0x104] ss:$8 sps:$4 sm:$0xff]  }
 0x385   :  { %v516_v22 = vadd.f32 %v512_v19, %v503_v20  ;;  %v515_v23 = vadd.f32 %v508_v18, %v502_v21 }
 0x387   :  { %v518_v24 = vmax.f32 %v516_v22, 0.0  ;;  %v517_v25 = vmax.f32 %v515_v23, 0.0 }
 0x389   :  { %v520_v26 = vpack.c.bf16 %v518_v24, %v518_v24  ;;  %v519_v27 = vpack.c.bf16 %v517_v25, %v517_v25 }
 0x38b   :  { %937 = vmatprep.mubr.bf16.mxu1 %v520_v26  ;;  %978 = vmatprep.mubr.bf16.mxu0 %v520_v26 }
 0x38c   :  { %938 = vmatmul.mubr.bf16.vlgmr.msra.gmra.mrb[4].mxu1 %v519_v27  ;;  %979 = vmatmul.mubr.bf16.vlgmr.msra.gmra.mrb[8].mxu0 %v519_v27 }
 0x38d   :  { %1536 = vmatpush1.bf16.msra.mxu1 %v2594_v29 }
 0x38e   :  { %1537 = vmatprep.subr.bf16.mxu1 %v2599_v30 }
 0x391   :  { %1538 = vmatpush1.bf16.msra.mxu1 %v2597_v31 }
 0x392   :  { %1539 = vmatprep.subr.bf16.mxu1 %v2602_v32 }
 0x395   :  { %1540 = vmatpush1.bf16.msra.mxu1 %v2600_v33 }
 0x396   :  { %1541 = vmatprep.subr.bf16.mxu1 %v2605_v34 }
 0x399   :  { %1542 = vmatpush1.bf16.msra.mxu1 %v2603_v35 }
 0x39a   :  { %1543 = vmatprep.subr.bf16.mxu1 %v2608_v36 }
 0x39d   :  { %1544 = vmatpush1.bf16.msra.mxu1 %v2606_v37 }
 0x39e   :  { %1545 = vmatprep.subr.bf16.mxu1 %v2611_v38 }
 0x3a1   :  { %1546 = vmatpush1.bf16.msra.mxu1 %v2609_v39 }
 0x3a2   :  { %1547 = vmatprep.subr.bf16.mxu1 %v2614_v40 }
 0x3a5   :  { %1548 = vmatpush1.bf16.msra.mxu1 %v2612_v41 }
 0x3a6   :  { %1549 = vmatprep.subr.bf16.mxu1 %v2617_v42 }
 0x3a9   :  { %1550 = vmatpush1.bf16.msra.mxu1 %v2615_v43 }
 0x3aa   :  { %1551 = vmatprep.subr.bf16.mxu1 %v2620_v44 }
 0x3ad   :  { %1552 = vmatpush1.bf16.msra.mxu1 %v2618_v45 }
 0x3ae   :  { %1553 = vmatprep.subr.bf16.mxu1 %v2623_v46 }
 0x3b1   :  { %1554 = vmatpush1.bf16.msra.mxu1 %v2621_v47 }
 0x3b2   :  { %1555 = vmatprep.subr.bf16.mxu1 %v2626_v48 }
 0x3b5   :  { %1556 = vmatpush1.bf16.msra.mxu1 %v2624_v49 }
 0x3b6   :  { %1557 = vmatprep.subr.bf16.mxu1 %v2629_v50 }
 0x3b9   :  { %1558 = vmatpush1.bf16.msra.mxu1 %v2627_v51 }
 0x3ba   :  { %1559 = vmatprep.subr.bf16.mxu1 %v2632_v52 }
 0x3bd   :  { %1560 = vmatpush1.bf16.msra.mxu1 %v2630_v53 }
 0x3be   :  { %1561 = vmatprep.subr.bf16.mxu1 %v2635_v54 }
 0x3c1   :  { %1562 = vmatpush1.bf16.msra.mxu1 %v2633_v55 }
 0x3c2   :  { %1563 = vmatprep.subr.bf16.mxu1 %v2638_v56 }
 0x3c5   :  { %1564 = vmatpush1.bf16.msra.mxu1 %v2636_v57 }
 0x3c6   :  { %1565 = vmatprep.subr.bf16.mxu1 %v2641_v58 }
 0x3c9   :  { %1566 = vmatpush1.bf16.msra.mxu1 %v2639_v59 }
 0x3ca   :  { %1576 = vmatprep.subr.bf16.mxu1 %v2644_v60 }
 0x45f   :  { %v939_v61 = vpop.f32.mrb[4].mxu1  ;;  %v980_v62 = vpop.f32.mrb[8].mxu0 }
 0x460   :  { %v987_v63 = vrot.slane %v939_v61, 4  ;;  %v999_v1 = vrot.slane %v980_v62, 4  ;;  %v941_v2 = vpop.f32.mrb[5].mxu1  ;;  %v982_v3 = vpop.f32.mrb[9].mxu0 }
 0x461   :  { %v993_v5 = vrot.slane %v941_v2, 4  ;;  %v1005_v7 = vrot.slane %v982_v3, 4  ;;  %v943_v8 = vpop.f32.mrb[6].mxu1  ;;  %v984_v9 = vpop.f32.mrb[10].mxu0 }
 0x462   :  { %v988_v10 = vadd.f32 %v987_v63, %v939_v61  ;;  %v1000_v11 = vadd.f32 %v999_v1, %v980_v62  ;;  %v944_v14 = vpop.f32.mrb[7].mxu1  ;;  %v985_v15 = vpop.f32.mrb[11].mxu0 }
 0x463   :  { %v994_v16 = vadd.f32 %v993_v5, %v941_v2  ;;  %v1006_v17 = vadd.f32 %v1005_v7, %v982_v3 }
 0x464   :  { %v989_v18 = vrot.slane %v988_v10, 2  ;;  %v1001_v19 = vrot.slane %v1000_v11, 2 }
 0x465   :  { %v995_v20 = vrot.slane %v994_v16, 2  ;;  %v1007_v21 = vrot.slane %v1006_v17, 2 }
 0x466   :  { %v990_v22 = vadd.f32 %v989_v18, %v988_v10  ;;  %v1002_v23 = vadd.f32 %v1001_v19, %v1000_v11 }
 0x467   :  { %v996_v24 = vadd.f32 %v995_v20, %v994_v16  ;;  %v1008_v25 = vadd.f32 %v1007_v21, %v1006_v17 }
 0x468   :  { %v991_v26 = vrot.slane %v990_v22, 1  ;;  %v1003_v27 = vrot.slane %v1002_v23, 1 }
 0x469   :  { %v997_v28 = vrot.slane %v996_v24, 1  ;;  %v1009_v29 = vrot.slane %v1008_v25, 1 }
 0x46a   :  { %v992_v30 = vadd.f32 %v991_v26, %v990_v22  ;;  %v1004_v31 = vadd.f32 %v1003_v27, %v1002_v23 }
 0x46b   :  { %v998_v32 = vadd.f32 %v997_v28, %v996_v24  ;;  %v1010_v33 = vadd.f32 %v1009_v29, %v1008_v25  ;;  %v1052_v28 = vld [vmem:[#allocation9 + $0x6] ss:$8 sm:$0xf] }
 0x46c   :  { %v1011_v34 = vmul.f32 0.125, %v992_v30  ;;  %v1013_v35 = vmul.f32 0.125, %v1004_v31  ;;  %v1108_v30 = vsub.s32 3, %v2989_v4  ;;  %v1054_v31 = vld [vmem:[#allocation9 + $0x7] ss:$8 sm:$0xf] }
 0x46d   :  { %v1012_v36 = vmul.f32 0.125, %v998_v32  ;;  %v1014_v37 = vmul.f32 0.125, %v1010_v33  ;;  %v1104_v32 = vsub.s32 2, %v2989_v4 }
 0x46e   :  { %v3006_v38 = vsub.f32 %v939_v61, %v1011_v34  ;;  %v3008_v39 = vsub.f32 %v980_v62, %v1013_v35  ;;  %v1126_v34 = vrot.slane %v1054_v31, %v3000_v13  ;;  %v1122_v35 = vrot.slane %v1054_v31, %v2997_v12 }
 0x46f   :  { %v3010_v40 = vsub.f32 %v941_v2, %v1012_v36  ;;  %v3012_v41 = vsub.f32 %v982_v3, %v1014_v37  ;;  %v1134_v36 = vrot.slane %v1054_v31, %v1108_v30  ;;  %v1130_v37 = vrot.slane %v1054_v31, %v1104_v32  ;;  %v2692_v31 = vld [vmem:[#allocation4 + $0x90] sm:$0xff]  }
 0x470   :  { %v1019_v42 = vmul.f32 %v3006_v38, %v3006_v38  ;;  %v1021_v43 = vmul.f32 %v3008_v39, %v3008_v39 }
 0x471   :  { %v1020_v44 = vmul.f32 %v3010_v40, %v3010_v40  ;;  %v1022_v45 = vmul.f32 %v3012_v41, %v3012_v41 }
 0x472   :  { %v1023_v46 = vrot.slane %v1019_v42, 4  ;;  %v1035_v47 = vrot.slane %v1021_v43, 4 }
 0x473   :  { %v1029_v48 = vrot.slane %v1020_v44, 4  ;;  %v1041_v49 = vrot.slane %v1022_v45, 4 }
 0x474   :  { %v1024_v50 = vadd.f32 %v1023_v46, %v1019_v42  ;;  %v1036_v51 = vadd.f32 %v1035_v47, %v1021_v43 }
 0x475   :  { %v1030_v52 = vadd.f32 %v1029_v48, %v1020_v44  ;;  %v1042_v53 = vadd.f32 %v1041_v49, %v1022_v45 }
 0x476   :  { %v1025_v54 = vrot.slane %v1024_v50, 2  ;;  %v1037_v55 = vrot.slane %v1036_v51, 2 }
 0x477   :  { %v1031_v56 = vrot.slane %v1030_v52, 2  ;;  %v1043_v57 = vrot.slane %v1042_v53, 2 }
 0x478   :  { %v1026_v58 = vadd.f32 %v1025_v54, %v1024_v50  ;;  %v1038_v59 = vadd.f32 %v1037_v55, %v1036_v51 }
 0x479   :  { %v1032_v60 = vadd.f32 %v1031_v56, %v1030_v52  ;;  %v1044_v61 = vadd.f32 %v1043_v57, %v1042_v53  ;;  %v2642_v57 = vld [vmem:[#allocation6 + $0x180] ss:$8 sps:$4 sm:$0xff]  }
 0x47a   :  { %v1027_v62 = vrot.slane %v1026_v58, 1  ;;  %v1039_v63 = vrot.slane %v1038_v59, 1 }
 0x47b   :  { %v1033_v1 = vrot.slane %v1032_v60, 1  ;;  %v1045_v2 = vrot.slane %v1044_v61, 1 }
 0x47c   :  { %v1028_v3 = vadd.f32 %v1027_v62, %v1026_v58  ;;  %v1040_v5 = vadd.f32 %v1039_v63, %v1038_v59  ;;  %v2647_v59 = vld [vmem:[#allocation6 + $0x194] ss:$8 sps:$4 sm:$0xff]   ;;  %v2656_v62 = vld [vmem:[#allocation6 + $0x1c4] ss:$8 sps:$4 sm:$0xff]   ;;  %v2654_v63 = vld [vmem:[#allocation6 + $0x1c0] ss:$8 sps:$4 sm:$0xff]  }
 0x47d   :  { %v1034_v7 = vadd.f32 %v1033_v1, %v1032_v60  ;;  %v1046_v8 = vadd.f32 %v1045_v2, %v1044_v61  ;;  %v2653_v60 = vld [vmem:[#allocation6 + $0x1b4] ss:$8 sps:$4 sm:$0xff]   ;;  %v2651_v61 = vld [vmem:[#allocation6 + $0x1b0] ss:$8 sps:$4 sm:$0xff]  }
 0x47e   :  { %v1047_v9 = vmul.f32 0.125, %v1028_v3  ;;  %v1049_v10 = vmul.f32 0.125, %v1040_v5  ;;  %v2659_v1 = vld [vmem:[#allocation6 + $0x1d4] ss:$8 sps:$4 sm:$0xff]   ;;  %v2657_v2 = vld [vmem:[#allocation6 + $0x1d0] ss:$8 sps:$4 sm:$0xff]  }
 0x47f   :  { %v1048_v11 = vmul.f32 0.125, %v1034_v7  ;;  %v1050_v14 = vmul.f32 0.125, %v1046_v8  ;;  %v2662_v3 = vld [vmem:[#allocation6 + $0x1e4] ss:$8 sps:$4 sm:$0xff]   ;;  %v2660_v5 = vld [vmem:[#allocation6 + $0x1e0] ss:$8 sps:$4 sm:$0xff]  }
 0x480   :  { %v1055_v15 = vadd.f32 1e-05, %v1047_v9  ;;  %v1057_v16 = vadd.f32 1e-05, %v1049_v10  ;;  %v2665_v7 = vld [vmem:[#allocation6 + $0x1f4] ss:$8 sps:$4 sm:$0xff]  }
 0x481   :  { %v1056_v17 = vadd.f32 1e-05, %v1048_v11  ;;  %v1058_v18 = vadd.f32 1e-05, %v1050_v14  ;;  %v2663_v8 = vld [vmem:[#allocation6 + $0x1f0] ss:$8 sps:$4 sm:$0xff]  }
 0x482   :  { %2730 = vrsqrt.f32 %v1055_v15  ;;  %v2668_v9 = vld [vmem:[#allocation6 + $0x204] ss:$8 sps:$4 sm:$0xff]   ;;  %v2666_v10 = vld [vmem:[#allocation6 + $0x200] ss:$8 sps:$4 sm:$0xff]   ;;  %v2671_v11 = vld [vmem:[#allocation6 + $0x214] ss:$8 sps:$4 sm:$0xff]  }
 0x483   :  { %2732 = vrsqrt.f32 %v1057_v16  ;;  %v2669_v14 = vld [vmem:[#allocation6 + $0x210] ss:$8 sps:$4 sm:$0xff]   ;;  %v2674_v15 = vld [vmem:[#allocation6 + $0x224] ss:$8 sps:$4 sm:$0xff]   ;;  %v2672_v16 = vld [vmem:[#allocation6 + $0x220] ss:$8 sps:$4 sm:$0xff]  }
 0x484   :  { %2734 = vrsqrt.f32 %v1056_v17  ;;  %v2677_v17 = vld [vmem:[#allocation6 + $0x234] ss:$8 sps:$4 sm:$0xff]  }
 0x485   :  { %2736 = vrsqrt.f32 %v1058_v18  ;;  %v2675_v18 = vld [vmem:[#allocation6 + $0x230] ss:$8 sps:$4 sm:$0xff]  }
 0x48c   :  { %v2731_v19 = vpop.eup %2730 }
 0x48d   :  { %v2733_v20 = vpop.eup %2732 }
 0x48e   :  { %v2735_v21 = vpop.eup %2734 }
 0x48f   :  { %v2737_v22 = vpop.eup %2736  ;;  %v1067_v23 = vcombine.low %v2731_v19, %v2735_v21  ;;  %v2680_v19 = vld [vmem:[#allocation6 + $0x244] ss:$8 sps:$4 sm:$0xff]   ;;  %v2683_v21 = vld [vmem:[#allocation6 + $0x254] ss:$8 sps:$4 sm:$0xff]  }
 0x490   :  { %v1068_v24 = vcombine.low %v2733_v20, %v2737_v22  ;;  %v2678_v20 = vld [vmem:[#allocation6 + $0x240] ss:$8 sps:$4 sm:$0xff]   ;;  %v2681_v22 = vld [vmem:[#allocation6 + $0x250] ss:$8 sps:$4 sm:$0xff]  }
 0x491   :  { %v1075_v25 = vrot.slane %v1067_v23, %v2992_v6  ;;  %v2686_v23 = vld [vmem:[#allocation6 + $0x264] ss:$8 sps:$4 sm:$0xff]  }
 0x492   :  { %v1082_v26 = vrot.slane %v1068_v24, %v2992_v6  ;;  %v2684_v24 = vld [vmem:[#allocation6 + $0x260] ss:$8 sps:$4 sm:$0xff]  }
 0x494   :  { %v1083_v27 = vcombine.low %v1075_v25, %v1082_v26  ;;  %v2689_v25 = vld [vmem:[#allocation6 + $0x274] ss:$8 sps:$4 sm:$0xff]   ;;  %v2687_v26 = vld [vmem:[#allocation6 + $0x270] ss:$8 sps:$4 sm:$0xff]  }
 0x496   :  { %v1090_v29 = vrot.slane %v1083_v27, %v2992_v6 }
 0x498   :  { %v1092_v33 = vmul.f32 %v1090_v29, %v1052_v28  ;;  %v2690_v29 = vld [vmem:[#allocation4 + $0x88] sm:$0xff]  }
 0x499   :  { %2338 = vmatprep.subr.bf16.mxu0 %v2690_v29  ;;  %v1652_v29 = vld [vmem:[#allocation9 + $0x21] ss:$8 sm:$0x3] }
 0x49a   :  { %v1109_v42 = vrot.slane %v1092_v33, %v1108_v30  ;;  %v1101_v43 = vrot.slane %v1092_v33, %v3000_v13  ;;  %v1097_v44 = vrot.slane %v1092_v33, %v2997_v12  ;;  %v1105_v45 = vrot.slane %v1092_v33, %v1104_v32  ;;  %v2691_v30 = vld [vmem:[#allocation4 + $0x48] sm:$0xff]   ;;  %v2693_v32 = vld [vmem:[#allocation4 + $0x50] sm:$0xff]   ;;  %v2694_v33 = vld [vmem:[#allocation4 + $0x98] sm:$0xff]  }
 0x49b   :  { %2339 = vmatpush3.bf16.msra.mxu0 %v2691_v30 }
 0x49c   :  { %v1117_v46 = vmul.f32 %v1109_v42, %v3012_v41  ;;  %v1115_v47 = vmul.f32 %v1101_v43, %v3010_v40  ;;  %v1114_v48 = vmul.f32 %v1097_v44, %v3006_v38  ;;  %v1116_v4 = vmul.f32 %v1105_v45, %v3008_v39  ;;  %v2645_v38 = vld [vmem:[#allocation6 + $0x190] ss:$8 sps:$4 sm:$0xff]   ;;  %v2650_v39 = vld [vmem:[#allocation6 + $0x1a4] ss:$8 sps:$4 sm:$0xff]   ;;  %v2648_v40 = vld [vmem:[#allocation6 + $0x1a0] ss:$8 sps:$4 sm:$0xff]   ;;  %2340 = vmatprep.subr.bf16.mxu0 %v2692_v31 }
 0x49d   :  { %v2699_v42 = vld [vmem:[#allocation4 + $0x68] sm:$0xff]   ;;  %v2700_v43 = vld [vmem:[#allocation4 + $0xb0] sm:$0xff]   ;;  %v2702_v45 = vld [vmem:[#allocation4 + $0xb8] sm:$0xff]  }
 0x49e   :  { %v1140_v49 = vadd.f32 %v1126_v34, %v1115_v47  ;;  %v1139_v50 = vadd.f32 %v1122_v35, %v1114_v48  ;;  %v1142_v51 = vadd.f32 %v1134_v36, %v1117_v46  ;;  %v3035_v52 = vadd.f32 %v1130_v37, %v1116_v4  ;;  %v2695_v34 = vld [vmem:[#allocation4 + $0x58] sm:$0xff]   ;;  %v2696_v35 = vld [vmem:[#allocation4 + $0xa0] sm:$0xff]   ;;  %v2698_v37 = vld [vmem:[#allocation4 + $0xa8] sm:$0xff]  }
 0x49f   :  { %2341 = vmatpush3.bf16.msra.mxu0 %v2693_v32  ;;  %v2697_v36 = vld [vmem:[#allocation4 + $0x60] sm:$0xff]   ;;  %v2701_v44 = vld [vmem:[#allocation4 + $0x70] sm:$0xff]   ;;  %v2703_v46 = vld [vmem:[#allocation4 + $0x78] sm:$0xff]  }
 0x4a0   :  { %v1144_v53 = vmax.f32 %v1140_v49, 0.0  ;;  %v1143_v54 = vmax.f32 %v1139_v50, 0.0  ;;  %v1146_v55 = vmax.f32 %v1142_v51, 0.0  ;;  %v1145_v27 = vmax.f32 %v3035_v52, 0.0  ;;  %2342 = vmatprep.subr.bf16.mxu0 %v2694_v33  ;;  %v2704_v47 = vld [vmem:[#allocation4 + $0xc0] sm:$0xff]  }
 0x4a1   :  { %v2705_v48 = vld [vmem:[#allocation4 + $0x80] sm:$0xff]   ;;  %v1693_v33 = vrot.slane %v1652_v29, %v2997_v12 }
 0x4a2   :  { %v1148_v56 = vpack.c.bf16 %v1144_v53, %v1144_v53  ;;  %v1147_v58 = vpack.c.bf16 %v1143_v54, %v1143_v54  ;;  %v1150_v41 = vpack.c.bf16 %v1146_v55, %v1146_v55  ;;  %v1149_v28 = vpack.c.bf16 %v1145_v27, %v1145_v27  ;;  %v1650_v27 = vld [vmem:[#allocation9 + $0x20] ss:$8 sm:$0x3] }
 0x4a3   :  { %2343 = vmatpush3.bf16.msra.mxu0 %v2695_v34  ;;  %v1697_v34 = vrot.slane %v1652_v29, %v3000_v13 }
 0x4a4   :  { %1567 = vmatprep.mubr.bf16.mxu1 %v1148_v56  ;;  %2344 = vmatprep.subr.bf16.mxu0 %v2696_v35 }
 0x4a5   :  { %1568 = vmatmul.mubr.bf16.vlgmr.msra.gmra.mrb[8].mxu1 %v1147_v58 }
 0x4a6   :  { %1577 = vmatpush1.bf16.msra.mxu1 %v2642_v57  ;;  %1608 = vmatprep.mubr.bf16.mxu1 %v1150_v41 }
 0x4a7   :  { %1578 = vmatprep.subr.bf16.mxu1 %v2647_v59  ;;  %2345 = vmatpush3.bf16.msra.mxu0 %v2697_v36 }
 0x4a8   :  { %2346 = vmatprep.subr.bf16.mxu0 %v2698_v37 }
 0x4aa   :  { %1579 = vmatpush1.bf16.msra.mxu1 %v2645_v38 }
 0x4ab   :  { %1580 = vmatprep.subr.bf16.mxu1 %v2650_v39  ;;  %2347 = vmatpush3.bf16.msra.mxu0 %v2699_v42 }
 0x4ac   :  { %2348 = vmatprep.subr.bf16.mxu0 %v2700_v43 }
 0x4ae   :  { %1581 = vmatpush1.bf16.msra.mxu1 %v2648_v40 }
 0x4af   :  { %1582 = vmatprep.subr.bf16.mxu1 %v2653_v60  ;;  %2349 = vmatpush3.bf16.msra.mxu0 %v2701_v44 }
 0x4b0   :  { %2350 = vmatprep.subr.bf16.mxu0 %v2702_v45 }
 0x4b2   :  { %1583 = vmatpush1.bf16.msra.mxu1 %v2651_v61 }
 0x4b3   :  { %1584 = vmatprep.subr.bf16.mxu1 %v2656_v62  ;;  %2351 = vmatpush3.bf16.msra.mxu0 %v2703_v46 }
 0x4b4   :  { %2352 = vmatprep.subr.bf16.mxu0 %v2704_v47  ;;  %v2709_v47 = vld [vmem:[#allocation4 + $0xe0] sm:$0xff]  }
 0x4b6   :  { %1585 = vmatpush1.bf16.msra.mxu1 %v2654_v63 }
 0x4b7   :  { %1586 = vmatprep.subr.bf16.mxu1 %v2659_v1  ;;  %2353 = vmatpush3.bf16.msra.mxu0 %v2705_v48  ;;  %v2710_v48 = vld [vmem:[#allocation4 + $0xe8] sm:$0xff]  }
 0x4b8   :  { %2404 = vmatprep.subr.bf16.mxu0 %v2875_v0 }
 0x4ba   :  { %1587 = vmatpush1.bf16.msra.mxu1 %v2657_v2 }
 0x4bb   :  { %1588 = vmatprep.subr.bf16.mxu1 %v2662_v3 }
 0x4be   :  { %1589 = vmatpush1.bf16.msra.mxu1 %v2660_v5 }
 0x4bf   :  { %1590 = vmatprep.subr.bf16.mxu1 %v2665_v7 }
 0x4c2   :  { %1591 = vmatpush1.bf16.msra.mxu1 %v2663_v8 }
 0x4c3   :  { %1592 = vmatprep.subr.bf16.mxu1 %v2668_v9 }
 0x4c6   :  { %1593 = vmatpush1.bf16.msra.mxu1 %v2666_v10 }
 0x4c7   :  { %1594 = vmatprep.subr.bf16.mxu1 %v2671_v11 }
 0x4ca   :  { %1595 = vmatpush1.bf16.msra.mxu1 %v2669_v14 }
 0x4cb   :  { %1596 = vmatprep.subr.bf16.mxu1 %v2674_v15 }
 0x4ce   :  { %1597 = vmatpush1.bf16.msra.mxu1 %v2672_v16 }
 0x4cf   :  { %1598 = vmatprep.subr.bf16.mxu1 %v2677_v17 }
 0x4d2   :  { %1599 = vmatpush1.bf16.msra.mxu1 %v2675_v18 }
 0x4d3   :  { %1600 = vmatprep.subr.bf16.mxu1 %v2680_v19 }
 0x4d6   :  { %1601 = vmatpush1.bf16.msra.mxu1 %v2678_v20 }
 0x4d7   :  { %1602 = vmatprep.subr.bf16.mxu1 %v2683_v21 }
 0x4da   :  { %1603 = vmatpush1.bf16.msra.mxu1 %v2681_v22 }
 0x4db   :  { %1604 = vmatprep.subr.bf16.mxu1 %v2686_v23 }
 0x4de   :  { %1605 = vmatpush1.bf16.msra.mxu1 %v2684_v24 }
 0x4df   :  { %1606 = vmatprep.subr.bf16.mxu1 %v2689_v25 }
 0x4e2   :  { %1607 = vmatpush1.bf16.msra.mxu1 %v2687_v26 }
 0x4e5   :  { %1609 = vmatmul.mubr.bf16.vlgmr.msra.gmra.mrb[8].mxu1 %v1149_v28 }
 0x5b8   :  { %v1610_v4 = vpop.f32.mrb[8].mxu1 }
 0x5b9   :  { %v1617_v49 = vrot.slane %v1610_v4, 4  ;;  %v1612_v50 = vpop.f32.mrb[9].mxu1 }
 0x5ba   :  { %v1623_v51 = vrot.slane %v1612_v50, 4  ;;  %v1614_v52 = vpop.f32.mrb[10].mxu1 }
 0x5bb   :  { %v1618_v53 = vadd.f32 %v1617_v49, %v1610_v4  ;;  %v1615_v54 = vpop.f32.mrb[11].mxu1  ;;  %v2712_v49 = vld [vmem:[#allocation4 + $0xf8] sm:$0xff]  }
 0x5bc   :  { %v1624_v55 = vadd.f32 %v1623_v51, %v1612_v50 }
 0x5bd   :  { %v1619_v56 = vrot.slane %v1618_v53, 2 }
 0x5be   :  { %v1625_v57 = vrot.slane %v1624_v55, 2 }
 0x5bf   :  { %v1620_v58 = vadd.f32 %v1619_v56, %v1618_v53 }
 0x5c0   :  { %v1626_v59 = vadd.f32 %v1625_v57, %v1624_v55 }
 0x5c1   :  { %v1621_v41 = vrot.slane %v1620_v58, 1 }
 0x5c2   :  { %v1627_v38 = vrot.slane %v1626_v59, 1 }
 0x5c3   :  { %v1622_v39 = vadd.f32 %v1621_v41, %v1620_v58 }
 0x5c4   :  { %v1628_v40 = vadd.f32 %v1627_v38, %v1626_v59 }
 0x5c5   :  { %v1629_v60 = vmul.f32 0.125, %v1622_v39 }
 0x5c6   :  { %v1630_v61 = vmul.f32 0.125, %v1628_v40 }
 0x5c7   :  { %v1631_v62 = vsub.f32 %v1610_v4, %v1629_v60  ;;  %v2711_v4 = vld [vmem:[#allocation4 + $0xf0] sm:$0xff]  }
 0x5c8   :  { %v1632_v63 = vsub.f32 %v1612_v50, %v1630_v61  ;;  %v2713_v50 = vld [vmem:[#allocation4 + $0x100] sm:$0xff]  }
 0x5c9   :  { %v1633_v1 = vmul.f32 %v1631_v62, %v1631_v62 }
 0x5ca   :  { %v1634_v2 = vmul.f32 %v1632_v63, %v1632_v63 }
 0x5cb   :  { %v1635_v3 = vrot.slane %v1633_v1, 4 }
 0x5cc   :  { %v1641_v5 = vrot.slane %v1634_v2, 4 }
 0x5cd   :  { %v1636_v7 = vadd.f32 %v1635_v3, %v1633_v1 }
 0x5ce   :  { %v1642_v8 = vadd.f32 %v1641_v5, %v1634_v2 }
 0x5cf   :  { %v1637_v9 = vrot.slane %v1636_v7, 2 }
 0x5d0   :  { %v1643_v10 = vrot.slane %v1642_v8, 2 }
 0x5d1   :  { %v1638_v11 = vadd.f32 %v1637_v9, %v1636_v7 }
 0x5d2   :  { %v1644_v14 = vadd.f32 %v1643_v10, %v1642_v8  ;;  %v1890_v8 = vld [vmem:[#allocation9 + $0x22] ss:$0 sm:$0xff] }
 0x5d3   :  { %v1639_v15 = vrot.slane %v1638_v11, 1 }
 0x5d4   :  { %v1645_v16 = vrot.slane %v1644_v14, 1 }
 0x5d5   :  { %v1640_v17 = vadd.f32 %v1639_v15, %v1638_v11  ;;  %v1891_v11 = vld [vmem:[#allocation9 + $0x23] ss:$0 sm:$0xff] }
 0x5d6   :  { %v1646_v18 = vadd.f32 %v1645_v16, %v1644_v14 }
 0x5d7   :  { %v1647_v19 = vmul.f32 0.125, %v1640_v17 }
 0x5d8   :  { %v1648_v20 = vmul.f32 0.125, %v1646_v18  ;;  %v2714_v18 = vld [vmem:[#allocation4 + $0x108] sm:$0xff]  }
 0x5d9   :  { %v1653_v21 = vadd.f32 1e-05, %v1647_v19  ;;  %v2715_v19 = vld [vmem:[#allocation4 + $0x110] sm:$0xff]  }
 0x5da   :  { %v1654_v22 = vadd.f32 1e-05, %v1648_v20  ;;  %v2716_v20 = vld [vmem:[#allocation4 + $0x118] sm:$0xff]  }
 0x5db   :  { %2738 = vrsqrt.f32 %v1653_v21  ;;  %v2717_v21 = vld [vmem:[#allocation4 + $0x120] sm:$0xff]  }
 0x5dc   :  { %2740 = vrsqrt.f32 %v1654_v22  ;;  %v2718_v22 = vld [vmem:[#allocation4 + $0x128] sm:$0xff]  }
 0x5e5   :  { %v2739_v23 = vpop.eup %2738 }
 0x5e6   :  { %v2741_v24 = vpop.eup %2740 }
 0x5e7   :  { %v1659_v25 = vcombine.low %v2739_v23, %v2741_v24  ;;  %v2719_v23 = vld [vmem:[#allocation4 + $0x130] sm:$0xff]   ;;  %v2720_v24 = vld [vmem:[#allocation4 + $0x138] sm:$0xff]  }
 0x5e9   :  { %v1666_v26 = vrot.slane %v1659_v25, %v2992_v6  ;;  %v2721_v25 = vld [vmem:[#allocation4 + $0x140] sm:$0xff]  }
 0x5eb   :  { %v1673_v28 = vrot.slane %v1666_v26, %v2992_v6  ;;  %v2706_v6 = vld [vmem:[#allocation4 + $0xc8] sm:$0xff]  }
 0x5ed   :  { %v1675_v30 = vmul.f32 %v1673_v28, %v1650_v27 }
 0x5ef   :  { %v1680_v31 = vrot.slane %v1675_v30, %v2997_v12  ;;  %v1684_v32 = vrot.slane %v1675_v30, %v3000_v13  ;;  %v2707_v12 = vld [vmem:[#allocation4 + $0xd0] sm:$0xff]   ;;  %v2708_v13 = vld [vmem:[#allocation4 + $0xd8] sm:$0xff]  }
 0x5f1   :  { %v1688_v35 = vmul.f32 %v1684_v32, %v1632_v63  ;;  %v1687_v36 = vmul.f32 %v1680_v31, %v1631_v62 }
 0x5f3   :  { %v1701_v37 = vadd.f32 %v1697_v34, %v1688_v35  ;;  %v1700_v42 = vadd.f32 %v1693_v33, %v1687_v36 }
 0x5f5   :  { %v1703_v43 = vmax.f32 %v1701_v37, 0.0  ;;  %v1702_v44 = vmax.f32 %v1700_v42, 0.0 }
 0x5f7   :  { %v1705_v45 = vpack.c.bf16 %v1703_v43, %v1703_v43  ;;  %v1704_v46 = vpack.c.bf16 %v1702_v44, %v1702_v44 }
 0x5f9   :  { %1866 = vmatprep.mubr.bf16.mxu0 %v1705_v45 }
 0x5fa   :  { %1867 = vmatmul.mubr.bf16.vlgmr.msra.gmra.mrb[12].mxu0 %v1704_v46 }
 0x5fb   :  { %2420 = vmatprep.mubr.msk.bf16.mxu0 %vm2876_vm0, %v2875_v0  ;;  %2405 = vmatpush3.bf16.msra.mxu0 %v2706_v6 }
 0x5fc   :  { %2406 = vmatprep.subr.bf16.mxu0 %v2875_v0 }
 0x5ff   :  { %2407 = vmatpush3.bf16.msra.mxu0 %v2707_v12 }
 0x600   :  { %2408 = vmatprep.subr.bf16.mxu0 %v2875_v0 }
 0x603   :  { %2409 = vmatpush3.bf16.msra.mxu0 %v2708_v13 }
 0x604   :  { %2410 = vmatprep.subr.bf16.mxu0 %v2875_v0 }
 0x607   :  { %2411 = vmatpush3.bf16.msra.mxu0 %v2709_v47  ;;  %v2019_v47 = vld [vmem:[#allocation9 + $0x24] ss:$0 sm:$0xff] }
 0x608   :  { %2412 = vmatprep.subr.bf16.mxu0 %v2875_v0 }
 0x60b   :  { %2413 = vmatpush3.bf16.msra.mxu0 %v2710_v48 }
 0x60c   :  { %2414 = vmatprep.subr.bf16.mxu0 %v2875_v0 }
 0x60f   :  { %2415 = vmatpush3.bf16.msra.mxu0 %v2711_v4 }
 0x610   :  { %2416 = vmatprep.subr.bf16.mxu0 %v2875_v0 }
 0x613   :  { %2417 = vmatpush3.bf16.msra.mxu0 %v2712_v49  ;;  %v2020_v49 = vld [vmem:[#allocation9 + $0x25] ss:$0 sm:$0xff] }
 0x614   :  { %2418 = vmatprep.subr.bf16.mxu0 %v2875_v0 }
 0x617   :  { %2419 = vmatpush3.bf16.msra.mxu0 %v2713_v50 }
 0x618   :  { %2424 = vmatprep.subr.bf16.mxu0 %v2875_v0 }
 0x6cd   :  { %v2354_v51 = vpop.f32.mrb[12].mxu0 }
 0x6ce   :  { %v2355_v52 = vpop.f32.mrb[13].mxu0 }
 0x6cf   :  { %v2356_v53 = vadd.f32 %v2355_v52, %v2354_v51  ;;  %v2357_v54 = vpop.f32.mrb[14].mxu0 }
 0x6d0   :  { %v2358_v55 = vpop.f32.mrb[15].mxu0  ;;  %v2028_v54 = vld [vmem:[#allocation9 + $0x26] ss:$0 sm:$0xff] }
 0x6d1   :  { %v1874_v56 = vrot.slane %v2356_v53, 4 }
 0x6d3   :  { %v1875_v57 = vadd.f32 %v2356_v53, %v1874_v56 }
 0x6d5   :  { %v1876_v58 = vrot.slane %v1875_v57, 2 }
 0x6d7   :  { %v1877_v59 = vadd.f32 %v1876_v58, %v1875_v57 }
 0x6d9   :  { %v1878_v41 = vrot.slane %v1877_v59, 1 }
 0x6db   :  { %v1879_v38 = vadd.f32 %v1878_v41, %v1877_v59 }
 0x6dd   :  { %v1880_v39 = vmul.f32 0.125, %v1879_v38 }
 0x6df   :  { %v1881_v40 = vsub.f32 %v2356_v53, %v1880_v39 }
 0x6e1   :  { %v1882_v60 = vmul.f32 %v1881_v40, %v1881_v40 }
 0x6e3   :  { %v1883_v61 = vrot.slane %v1882_v60, 4 }
 0x6e5   :  { %v1884_v62 = vadd.f32 %v1883_v61, %v1882_v60 }
 0x6e7   :  { %v1885_v63 = vrot.slane %v1884_v62, 2 }
 0x6e9   :  { %v1886_v1 = vadd.f32 %v1885_v63, %v1884_v62 }
 0x6eb   :  { %v1887_v2 = vrot.slane %v1886_v1, 1 }
 0x6ed   :  { %v1888_v3 = vadd.f32 %v1887_v2, %v1886_v1 }
 0x6ef   :  { %v1889_v5 = vmul.f32 0.125, %v1888_v3 }
 0x6f1   :  { %v1892_v7 = vadd.f32 1e-05, %v1889_v5 }
 0x6f3   :  { %2742 = vrsqrt.f32 %v1892_v7 }
 0x6fd   :  { %v2743_v9 = vpop.eup %2742 }
 0x6fe   :  { %v1894_v10 = vmul.f32 %v2743_v9, %v1890_v8 }
 0x700   :  { %v1895_v14 = vmul.f32 %v1894_v10, %v1881_v40 }
 0x702   :  { %v1896_v15 = vadd.f32 %v1895_v14, %v1891_v11 }
 0x704   :  { %v1897_v16 = vmax.f32 %v1896_v15, 0.0 }
 0x706   :  { %v1898_v17 = vpack.c.bf16 %v1897_v16, %v1897_v16 }
 0x708   :  { %2421 = vmatmul.mubr.bf16.vlgmr.msra.gmra.mrb[16].mxu0 %v1898_v17 }
 0x709   :  { %2440 = vmatprep.mubr.msk.bf16.mxu0 %vm2876_vm0, %v2875_v0  ;;  %2425 = vmatpush3.bf16.msra.mxu0 %v2714_v18 }
 0x70a   :  { %2426 = vmatprep.subr.bf16.mxu0 %v2875_v0 }
 0x70d   :  { %2427 = vmatpush3.bf16.msra.mxu0 %v2715_v19 }
 0x70e   :  { %2428 = vmatprep.subr.bf16.mxu0 %v2875_v0 }
 0x711   :  { %2429 = vmatpush3.bf16.msra.mxu0 %v2716_v20 }
 0x712   :  { %2430 = vmatprep.subr.bf16.mxu0 %v2875_v0 }
 0x715   :  { %2431 = vmatpush3.bf16.msra.mxu0 %v2717_v21 }
 0x716   :  { %2432 = vmatprep.subr.bf16.mxu0 %v2875_v0 }
 0x719   :  { %2433 = vmatpush3.bf16.msra.mxu0 %v2718_v22 }
 0x71a   :  { %2434 = vmatprep.subr.bf16.mxu0 %v2875_v0 }
 0x71d   :  { %2435 = vmatpush3.bf16.msra.mxu0 %v2719_v23 }
 0x71e   :  { %2436 = vmatprep.subr.bf16.mxu0 %v2875_v0 }
 0x721   :  { %2437 = vmatpush3.bf16.msra.mxu0 %v2720_v24 }
 0x722   :  { %2438 = vmatprep.subr.bf16.mxu0 %v2875_v0 }
 0x725   :  { %2439 = vmatpush3.bf16.msra.mxu0 %v2721_v25 }
 0x7db   :  { %v1997_v26 = vpop.f32.mrb[16].mxu0 }
 0x7dc   :  { %v2003_v27 = vrot.slane %v1997_v26, 4  ;;  %v2422_v28 = vpop.f32.mrb[17].mxu0 }
 0x7dd   :  { %v2000_v29 = vpop.f32.mrb[18].mxu0 }
 0x7de   :  { %v2004_v30 = vadd.f32 %v2003_v27, %v1997_v26  ;;  %v2423_v31 = vpop.f32.mrb[19].mxu0 }
 0x7e0   :  { %v2005_v32 = vrot.slane %v2004_v30, 2 }
 0x7e2   :  { %v2006_v33 = vadd.f32 %v2005_v32, %v2004_v30 }
 0x7e4   :  { %v2007_v34 = vrot.slane %v2006_v33, 1 }
 0x7e6   :  { %v2008_v35 = vadd.f32 %v2007_v34, %v2006_v33 }
 0x7e8   :  { %v2009_v36 = vmul.f32 0.125, %v2008_v35 }
 0x7ea   :  { %v2010_v37 = vsub.f32 %v1997_v26, %v2009_v36 }
 0x7ec   :  { %v2011_v42 = vmul.f32 %v2010_v37, %v2010_v37 }
 0x7ee   :  { %v2012_v43 = vrot.slane %v2011_v42, 4 }
 0x7f0   :  { %v2013_v44 = vadd.f32 %v2012_v43, %v2011_v42 }
 0x7f2   :  { %v2014_v45 = vrot.slane %v2013_v44, 2 }
 0x7f4   :  { %v2015_v46 = vadd.f32 %v2014_v45, %v2013_v44 }
 0x7f6   :  { %v2016_v0 = vrot.slane %v2015_v46, 1 }
 0x7f8   :  { %v2017_v6 = vadd.f32 %v2016_v0, %v2015_v46 }
 0x7fa   :  { %v2018_v12 = vmul.f32 0.125, %v2017_v6 }
 0x7fc   :  { %v2021_v13 = vadd.f32 1e-05, %v2018_v12 }
 0x7fe   :  { %2744 = vrsqrt.f32 %v2021_v13 }
 0x808   :  { %v2745_v48 = vpop.eup %2744 }
 0x809   :  { %v2023_v4 = vmul.f32 %v2745_v48, %v2019_v47 }
 0x80b   :  { %v2024_v50 = vmul.f32 %v2023_v4, %v2010_v37 }
 0x80d   :  { %v2025_v51 = vadd.f32 %v2024_v50, %v2020_v49 }
 0x80f   :  { %v2026_v52 = vmax.f32 %v2025_v51, 0.0 }
 0x811   :  { %v2027_v53 = vpack.c.bf16 %v2026_v52, %v2026_v52 }
 0x813   :  { %2441 = vmatmul.mubr.bf16.vlgmr.msra.gmra.mrb[20].mxu0 %v2027_v53 }
 0x8e6   :  { %v2127_v55 = vpop.f32.mrb[20].mxu0 }
 0x8e7   :  { %v2128_v56 = vadd.f32 %v2127_v55, %v2028_v54  ;;  %v2442_v57 = vpop.f32.mrb[21].mxu0 }
 0x8e8   :  { %v2130_v58 = vpop.f32.mrb[22].mxu0 }
 0x8e9   :  { %2133 = vst [vmem:[%s3072_s5] sm:$0xff] %v2128_v56  ;;  %v2443_v59 = vpop.f32.mrb[23].mxu0 }
 0x8ea   :  { %2138 = vsyncpa [#allocation3], 1 }
 0x8eb   :  { %2139 = vsyncpa [#allocation5], 1 }
 0x8ec   :  { %2140 = vsyncpa [#allocation8], 1 }

</bundles_post_ra>
